<compile_context>
chip_gen: v5e
topology: v5e:2x2
jax: 0.10.0
libtpu: 0.0.40
codegen_flags: <defaults>
</compile_context>

<pallas_src>
import jax
import jax.numpy as jnp
from jax.experimental import pallas as pl
from jax.experimental.pallas import tpu as pltpu


D_IN, D_H1, D_H2, D_OUT = 14, 64, 32, 2


def _mlp_kernel(x_ref, w1_ref, b1_ref, w2_ref, b2_ref, w3_ref, b3_ref, o_ref):
    # x arrives as f32 (no separate XLA cast pass over HBM); cast to bf16 on
    # the VPU just before the MXU, accumulate in f32.
    x = x_ref[...].astype(jnp.bfloat16)
    h1 = jnp.dot(x, w1_ref[...], preferred_element_type=jnp.float32)
    h1 = jnp.maximum(h1 + b1_ref[...], 0.0)                       # f32 VPU
    h2 = jnp.dot(h1.astype(jnp.bfloat16), w2_ref[...],
                 preferred_element_type=jnp.float32)
    h2 = jnp.maximum(h2 + b2_ref[...], 0.0)                       # f32 VPU
    # TODO(synk): the 32->2 matmul could move to VPU/XLU (broadcast-multiply +
    # cross-lane reduce) if a bundle dump shows the MXU on the critical path;
    # kept on the MXU for simplicity since it usually has slack here.
    out = jnp.dot(h2.astype(jnp.bfloat16), w3_ref[...],
                  preferred_element_type=jnp.float32)
    o_ref[...] = (out + b3_ref[...]).astype(o_ref.dtype)


def _round_up(x, m):
    return ((x + m - 1) // m) * m


def _choose_tm(batch, tm_max):
    # Big tiles amortize the ~0.35 us/step pipeline overhead; cap TM so
    # (a) the 1-D "parallel" grid has >= 2 steps whenever possible (v7x has
    #     2 TensorCores and only balanced multi-step grids use both), and
    # (b) double-buffered blocks + f32 intermediates stay far under VMEM
    #     (~19 MiB at TM=4096, under even v7x's 32 MiB scoped default).
    half = -(-batch // 2)                       # ceil(B / 2)
    return max(8, min(tm_max, _round_up(half, 8)))


def _mlp_pallas(x, w1, b1, w2, b2, w3, b3, *, tm):
    """x: (B, 14) f32. Weights bf16 stored (in, out); biases f32 (1, out)."""
    B = x.shape[0]
    resident = lambda a: pl.BlockSpec(a.shape, lambda i: (0, 0))
    return pl.pallas_call(
        _mlp_kernel,
        out_shape=jax.ShapeDtypeStruct((B, D_OUT), jnp.float32),
        grid=(pl.cdiv(B, tm),),                 # partial last tile is masked (no jnp.pad)
        in_specs=[
            pl.BlockSpec((tm, D_IN), lambda i: (i, 0)),   # pipelined x tiles
            resident(w1), resident(b1),                   # weights DMA'd once,
            resident(w2), resident(b2),                   # VMEM-resident across
            resident(w3), resident(b3),                   # all grid steps
        ],
        out_specs=pl.BlockSpec((tm, D_OUT), lambda i: (i, 0)),
        compiler_params=pltpu.CompilerParams(
            dimension_semantics=("parallel",),            # megacore-shard batch
            vmem_limit_bytes=32 * 1024 * 1024,            # above v5e's 16 MiB scoped
        ),                                                #   default, below v7x physical
    )(x, w1, b1, w2, b2, w3, b3)


def reference_forward(x, params):
    h1 = jnp.maximum(x @ params["w1"] + params["b1"], 0.0)
    h2 = jnp.maximum(h1 @ params["w2"] + params["b2"], 0.0)
    return h2 @ params["w3"] + params["b3"]


def prepare_params(params):
    """One-time conversion: bf16 weights (MXU inputs), f32 biases.

    Hoists the per-call .astype(bfloat16) passes out of the forward path."""
    return {
        "w1": params["w1"].astype(jnp.bfloat16),
        "w2": params["w2"].astype(jnp.bfloat16),
        "w3": params["w3"].astype(jnp.bfloat16),
        "b1": params["b1"].astype(jnp.float32),
        "b2": params["b2"].astype(jnp.float32),
        "b3": params["b3"].astype(jnp.float32),
    }


def mlp_forward(x, prep, *, tm_max=4096, min_pallas_batch=2048):
    """x: (B, 14) float32. prep: output of prepare_params (bf16 weights (in,out))."""
    B = x.shape[0]
    if B < max(min_pallas_batch, 16):
        # Below a few thousand rows a fully fused XLA MLP (no custom-call
        # boundary, no per-step overhead) wins; route small batches there.
        return reference_forward(x, prep)
    tm = _choose_tm(B, tm_max)
    return _mlp_pallas(x, prep["w1"], prep["b1"], prep["w2"], prep["b2"],
                       prep["w3"], prep["b3"], tm=tm)


def init_params(key):
    """torch.nn.Linear default init: U[-1/sqrt(fan_in), +1/sqrt(fan_in)].
    Weights stored as (in, out) for x @ W."""
    dims = [(D_IN, D_H1), (D_H1, D_H2), (D_H2, D_OUT)]
    params = {}
    keys = jax.random.split(key, 2 * len(dims))
    for i, (fan_in, fan_out) in enumerate(dims):
        bound = 1.0 / jnp.sqrt(jnp.float32(fan_in))
        params[f"w{i + 1}"] = jax.random.uniform(
            keys[2 * i], (fan_in, fan_out),
            minval=-bound, maxval=bound, dtype=jnp.float32)
        params[f"b{i + 1}"] = jax.random.uniform(
            keys[2 * i + 1], (1, fan_out),
            minval=-bound, maxval=bound, dtype=jnp.float32)
    return params


if __name__ == "__main__":
    key = jax.random.PRNGKey(0)
    k_param, k_x = jax.random.split(key)

    params = init_params(k_param)        # f32, PyTorch-style init
    prep = prepare_params(params)        # bf16 weights, cast exactly once

    # Small deterministic batch; B deliberately NOT a multiple of the tile so
    # the masked partial last block is exercised (tm=504 -> grid=(2,)).
    batch = 1000
    x = jax.random.normal(k_x, (batch, D_IN), dtype=jnp.float32)

    # min_pallas_batch lowered here so this small test actually runs the
    # Pallas path (production default keeps the crossover in the thousands).
    out = mlp_forward(x, prep, min_pallas_batch=64)
    out = jax.block_until_ready(out)

    ref = reference_forward(x, params)   # full-f32 reference
    assert out.shape == (batch, D_OUT), out.shape
    # bf16 matmul inputs with f32 accumulation -> loosened tolerance vs f32.
    assert bool(jnp.allclose(out, ref, atol=3e-2, rtol=3e-2)), "mismatch vs JAX reference"

    print("KERNEL_OK")
</pallas_src>

<mosaic_0001>
module attributes {stable_mosaic.version = 11 : i64} {
  func.func @_mlp_kernel(%arg0: i32, %arg1: memref<504x14xf32, #tpu.memory_space<vmem>>, %arg2: memref<14x64xbf16, #tpu.memory_space<vmem>>, %arg3: memref<1x64xf32, #tpu.memory_space<vmem>>, %arg4: memref<64x32xbf16, #tpu.memory_space<vmem>>, %arg5: memref<1x32xf32, #tpu.memory_space<vmem>>, %arg6: memref<32x2xbf16, #tpu.memory_space<vmem>>, %arg7: memref<1x2xf32, #tpu.memory_space<vmem>>, %arg8: memref<504x2xf32, #tpu.memory_space<vmem>>) attributes {dimension_semantics = [#tpu.dimension_semantics<parallel>], iteration_bounds = array<i64: 2>, scalar_prefetch = 0 : i64, scratch_operands = 0 : i64, tpu.core_type = #tpu.core_type<tc>, window_params = [{transform_indices = @transform_0, window_bounds = array<i64: 504, 14>}, {pipeline_mode = #tpu.pipeline_mode<synchronous>, transform_indices = @transform_1, window_bounds = array<i64: 14, 64>}, {pipeline_mode = #tpu.pipeline_mode<synchronous>, transform_indices = @transform_2, window_bounds = array<i64: 1, 64>}, {pipeline_mode = #tpu.pipeline_mode<synchronous>, transform_indices = @transform_3, window_bounds = array<i64: 64, 32>}, {pipeline_mode = #tpu.pipeline_mode<synchronous>, transform_indices = @transform_4, window_bounds = array<i64: 1, 32>}, {pipeline_mode = #tpu.pipeline_mode<synchronous>, transform_indices = @transform_5, window_bounds = array<i64: 32, 2>}, {pipeline_mode = #tpu.pipeline_mode<synchronous>, transform_indices = @transform_6, window_bounds = array<i64: 1, 2>}, {transform_indices = @transform_7, window_bounds = array<i64: 504, 2>}]} {
    %c0 = arith.constant 0 : index
    %c0_0 = arith.constant 0 : index
    %0 = vector.load %arg1[%c0, %c0_0] : memref<504x14xf32, #tpu.memory_space<vmem>>, vector<504x14xf32>
    %1 = arith.truncf %0 : vector<504x14xf32> to vector<504x14xbf16>
    %c0_1 = arith.constant 0 : index
    %c0_2 = arith.constant 0 : index
    %2 = vector.load %arg2[%c0_1, %c0_2] : memref<14x64xbf16, #tpu.memory_space<vmem>>, vector<14x64xbf16>
    %cst = arith.constant dense<0.000000e+00> : vector<504x64xf32>
    %3 = tpu.matmul %1, %2, %cst {dimension_numbers = #tpu.dot_dimension_numbers<[1], [0], [0], [1], [0, 0, 1, 1], [], []>} : vector<504x14xbf16>, vector<14x64xbf16>, vector<504x64xf32> -> vector<504x64xf32>
    %c0_3 = arith.constant 0 : index
    %c0_4 = arith.constant 0 : index
    %4 = vector.load %arg3[%c0_3, %c0_4] : memref<1x64xf32, #tpu.memory_space<vmem>>, vector<1x64xf32>
    %5 = vector.broadcast %4 : vector<1x64xf32> to vector<504x64xf32>
    %6 = arith.addf %3, %5 : vector<504x64xf32>
    %cst_5 = arith.constant 0.000000e+00 : f32
    %7 = vector.broadcast %cst_5 : f32 to vector<504x64xf32>
    %8 = arith.maximumf %6, %7 : vector<504x64xf32>
    %9 = arith.truncf %8 : vector<504x64xf32> to vector<504x64xbf16>
    %c0_6 = arith.constant 0 : index
    %c0_7 = arith.constant 0 : index
    %10 = vector.load %arg4[%c0_6, %c0_7] : memref<64x32xbf16, #tpu.memory_space<vmem>>, vector<64x32xbf16>
    %cst_8 = arith.constant dense<0.000000e+00> : vector<504x32xf32>
    %11 = tpu.matmul %9, %10, %cst_8 {dimension_numbers = #tpu.dot_dimension_numbers<[1], [0], [0], [1], [0, 0, 1, 1], [], []>} : vector<504x64xbf16>, vector<64x32xbf16>, vector<504x32xf32> -> vector<504x32xf32>
    %c0_9 = arith.constant 0 : index
    %c0_10 = arith.constant 0 : index
    %12 = vector.load %arg5[%c0_9, %c0_10] : memref<1x32xf32, #tpu.memory_space<vmem>>, vector<1x32xf32>
    %13 = vector.broadcast %12 : vector<1x32xf32> to vector<504x32xf32>
    %14 = arith.addf %11, %13 : vector<504x32xf32>
    %cst_11 = arith.constant 0.000000e+00 : f32
    %15 = vector.broadcast %cst_11 : f32 to vector<504x32xf32>
    %16 = arith.maximumf %14, %15 : vector<504x32xf32>
    %17 = arith.truncf %16 : vector<504x32xf32> to vector<504x32xbf16>
    %c0_12 = arith.constant 0 : index
    %c0_13 = arith.constant 0 : index
    %18 = vector.load %arg6[%c0_12, %c0_13] : memref<32x2xbf16, #tpu.memory_space<vmem>>, vector<32x2xbf16>
    %cst_14 = arith.constant dense<0.000000e+00> : vector<504x2xf32>
    %19 = tpu.matmul %17, %18, %cst_14 {dimension_numbers = #tpu.dot_dimension_numbers<[1], [0], [0], [1], [0, 0, 1, 1], [], []>} : vector<504x32xbf16>, vector<32x2xbf16>, vector<504x2xf32> -> vector<504x2xf32>
    %c0_15 = arith.constant 0 : index
    %c0_16 = arith.constant 0 : index
    %20 = vector.load %arg7[%c0_15, %c0_16] : memref<1x2xf32, #tpu.memory_space<vmem>>, vector<1x2xf32>
    %21 = vector.broadcast %20 : vector<1x2xf32> to vector<504x2xf32>
    %22 = arith.addf %19, %21 : vector<504x2xf32>
    %c0_17 = arith.constant 0 : index
    %c0_18 = arith.constant 0 : index
    %23 = vector.load %arg8[%c0_17, %c0_18] : memref<504x2xf32, #tpu.memory_space<vmem>>, vector<504x2xf32>
    tpu.vector_store %arg8[%c0_17, %c0_18], %22 {strides = array<i32>} : memref<504x2xf32, #tpu.memory_space<vmem>>, vector<504x2xf32>,
    return
  }
  func.func @transform_0(%arg0: i32) -> (i32, i32) {
    %c0_i32 = arith.constant 0 : i32
    %c0_i32_0 = arith.constant 0 : i32
    return %arg0, %c0_i32 : i32, i32
  }
  func.func @transform_1(%arg0: i32) -> (i32, i32) {
    %c0_i32 = arith.constant 0 : i32
    %c0_i32_0 = arith.constant 0 : i32
    %c0_i32_1 = arith.constant 0 : i32
    return %c0_i32, %c0_i32_0 : i32, i32
  }
  func.func @transform_2(%arg0: i32) -> (i32, i32) {
    %c0_i32 = arith.constant 0 : i32
    %c0_i32_0 = arith.constant 0 : i32
    %c0_i32_1 = arith.constant 0 : i32
    return %c0_i32, %c0_i32_0 : i32, i32
  }
  func.func @transform_3(%arg0: i32) -> (i32, i32) {
    %c0_i32 = arith.constant 0 : i32
    %c0_i32_0 = arith.constant 0 : i32
    %c0_i32_1 = arith.constant 0 : i32
    return %c0_i32, %c0_i32_0 : i32, i32
  }
  func.func @transform_4(%arg0: i32) -> (i32, i32) {
    %c0_i32 = arith.constant 0 : i32
    %c0_i32_0 = arith.constant 0 : i32
    %c0_i32_1 = arith.constant 0 : i32
    return %c0_i32, %c0_i32_0 : i32, i32
  }
  func.func @transform_5(%arg0: i32) -> (i32, i32) {
    %c0_i32 = arith.constant 0 : i32
    %c0_i32_0 = arith.constant 0 : i32
    %c0_i32_1 = arith.constant 0 : i32
    return %c0_i32, %c0_i32_0 : i32, i32
  }
  func.func @transform_6(%arg0: i32) -> (i32, i32) {
    %c0_i32 = arith.constant 0 : i32
    %c0_i32_0 = arith.constant 0 : i32
    %c0_i32_1 = arith.constant 0 : i32
    return %c0_i32, %c0_i32_0 : i32, i32
  }
  func.func @transform_7(%arg0: i32) -> (i32, i32) {
    %c0_i32 = arith.constant 0 : i32
    %c0_i32_0 = arith.constant 0 : i32
    return %arg0, %c0_i32 : i32, i32
  }
}

</mosaic_0001>

<bundles_post_ra>
// kernel: tpu_custom_call.1
= control target key start
LH: loop header
LB: loop body
LE: loop exit
PB: predicated region body
PF: predicated region fallthrough
CT: control target
= control target key end

     0   :  { %s2239_s24 = smov 0   ;;  %s2241_s25 = smov 0   ;;  %s2957_s0 = inlined_call_operand.vmem [shape: f32[1000,14], index: 0, kind: input, shape index: {}]   ;;  %s2958_s1 = inlined_call_operand.vmem [shape: bf16[14,64], index: 1, kind: input, shape index: {}]   ;;  %s2959_s2 = inlined_call_operand.vmem [shape: f32[1,64], index: 2, kind: input, shape index: {}]   ;;  %s2960_s3 = inlined_call_operand.vmem [shape: bf16[64,32], index: 3, kind: input, shape index: {}]   ;;  %s2961_s4 = inlined_call_operand.vmem [shape: f32[1,32], index: 4, kind: input, shape index: {}]   ;;  %s2962_s5 = inlined_call_operand.vmem [shape: bf16[32,2], index: 5, kind: input, shape index: {}]   ;;  %s2963_s6 = inlined_call_operand.vmem [shape: f32[1,2], index: 6, kind: input, shape index: {}]   ;;  %s2964_s7 = inlined_call_operand.vmem [shape: f32[1000,2], index: 7, kind: output, shape index: {}]  }
   0x1   :  { %s2243_s26 = smov 0  }
   0x2 LB: > { %s2252_s27 = sadd.s32 4294967295, %s2165_s26   ;;  %s2254_s28 = sadd.s32 1, %s2165_s26   ;;  %s2165_s26 = sphi %s2243_s26, %s2973_s26   ;;  %s2161_s25 = sphi %s2241_s25, %s2972_s25   ;;  %s2157_s24 = sphi %s2239_s24, %s2971_s24  }
   0x3   : > { %s173_s29 = ssub.s32 %s2165_s26, %s2254_s28  ;;  %s176_s30 = sadd.s32 1, %s2161_s25 }
   0x4   : > { %p174_p0 = scmp.eq.s32.totalorder %s173_s29, 0  ;;  %p186_p1 = scmp.ne.s32.totalorder %s2161_s25, %s2157_s24 }
   0x5   : > { %p187_p2 = scmp.eq.s32.totalorder %s2252_s27, 1  ;;  %p1859_p3 = scmp.ge.s32.totalorder %s2165_s26, 1 }
   0x6   : > { %s2262_s8 = scalar_select %p174_p0, %s2161_s25, %s176_s30  }
   0x7   : > { %p2264_p4 = por %p187_p2, %p186_p1  ;;  %p246_p5 = scmp.lt.s32.totalorder %s2165_s26, 3 }
   0x9   : > { %p247_p6 = pnand %p1859_p3, %p246_p5 }
   0xa   : > { %s2275_s14 = smul.u32 (!%p247_p6), 63, %s2252_s27  ;;  %s278_s21 = sand.u32 (!%p247_p6), 1, %s2157_s24  }
   0xb   : > { %250 = sbr.rel (%p247_p6) target bundleno = 1009 (0x3f1), region = 48 }
   0xc   : > { %p286_p7 = scmp.lt.s32.totalorder (!%p247_p6), %s2275_s14, 124  ;;  %s2017_s22 = smul.u32 (!%p247_p6), 504, %s278_s21 }
   0xe   : > { %s2495_s24 = scalar_lea.vmem (!%p247_p6), [#allocation2], %s2017_s22  }
  0x10   : > { %v1863_v0 = vld [vmem:[%s2958_s1] sm:$0xf]  ;;  %v2000_v1 = vld [vmem:[%s2958_s1] sm:$0x70]  ;;  %vm504_vm0 = vcmask 1046528   ;;  %s287_s15 = scalar_select %p286_p7, %s2275_s14, 124 }
  0x11   : > { %v1864_v2 = vor.u32 %v2000_v1, %v1863_v0  ;;  %vm407_vm1 = vcmask 113664   ;;  %v2004_v24 = vld [vmem:[%s2960_s3 + $0x18] sm:$0xff]  ;;  %v2003_v26 = vld [vmem:[%s2960_s3 + $0x10] sm:$0xff]  ;;  %v2002_v27 = vld [vmem:[%s2960_s3 + $0x8] sm:$0xff]  ;;  %vm807_vm2 = vcmask 523264   ;;  %vm1187_vm3 = vcmask 261120  }
  0x12   : > { %s1860_s16 = sshll.u32 %s287_s15, 3  ;;  %908 = vmatpush.bf16.msra.mxu1 %v2004_v24  ;;  %v2001_v28 = vld [vmem:[%s2960_s3] sm:$0xff]  ;;  %vm1452_vm4 = vcmask 15360   ;;  %s1524_s11 = ssub.s32 (%p2264_p4), 125, %s2275_s14 }
  0x13   : > { %v506_v3 = vsel %vm504_vm0, %v1864_v2, 0  ;;  %s2282_s19 = scalar_lea.vmem %s2957_s0, %s1860_s16  ;;  %v2325_v36 = vld [vmem:[%s2959_s2] ss:$0 sm:$0xff]  ;;  %s2007_s12 = smul.u32 (%p2264_p4), 504, %s2252_s27 }
  0x14   : > { %515 = vmatpush.bf16.msra.mxu0 %v506_v3  ;;  %2010 = vmatpush.bf16.msra.mxu3 %v506_v3  ;;  %v301_v4 = vld [vmem:[%s2282_s19] sm:$0xff]  ;;  %v302_v5 = vld [vmem:[%s2282_s19 + $0x8] sm:$0xff]  ;;  %v303_v7 = vld [vmem:[%s2282_s19 + $0x10] sm:$0xff]  ;;  %p1525_p8 = scmp.lt.s32.totalorder (%p2264_p4), %s1524_s11, 63 }
  0x15   : > { %v364_v6 = vpack.c.bf16 %v302_v5, %v301_v4  ;;  %v304_v8 = vld [vmem:[%s2282_s19 + $0x18] sm:$0xff]  ;;  %v305_v10 = vld [vmem:[%s2282_s19 + $0x20] sm:$0xff]  ;;  %v306_v11 = vld [vmem:[%s2282_s19 + $0x28] sm:$0xff]  ;;  %s2822_s16 = scalar_lea.vmem (%p2264_p4), %s2964_s7, %s2007_s12  }
  0x16   : > { %v365_v9 = vpack.c.bf16 %v304_v8, %v303_v7  ;;  %v366_v12 = vpack.c.bf16 %v306_v11, %v305_v10  ;;  %v307_v13 = vld [vmem:[%s2282_s19 + $0x30] sm:$0xff]  ;;  %v308_v14 = vld [vmem:[%s2282_s19 + $0x38] sm:$0xff]  ;;  %v309_v16 = vld [vmem:[%s2282_s19 + $0x40] sm:$0xff]  ;;  %909 = vmatpush.bf16.msra.mxu1 %v2003_v26 }
  0x17   : > { %1865 = vmatmul.msk.bf16.vlgmr.msra.gmra.mxu0 %vm407_vm1, %v364_v6  ;;  %v367_v15 = vpack.c.bf16 %v308_v14, %v307_v13  ;;  %v310_v17 = vld [vmem:[%s2282_s19 + $0x48] sm:$0xff]  ;;  %v311_v19 = vld [vmem:[%s2282_s19 + $0x50] sm:$0xff]  ;;  %v312_v20 = vld [vmem:[%s2282_s19 + $0x58] sm:$0xff] }
  0x18   : > { %v368_v18 = vpack.c.bf16 %v310_v17, %v309_v16  ;;  %v369_v21 = vpack.c.bf16 %v312_v20, %v311_v19  ;;  %v313_v22 = vld [vmem:[%s2282_s19 + $0x60] sm:$0xff]  ;;  %v314_v23 = vld [vmem:[%s2282_s19 + $0x68] sm:$0xff]  ;;  %2011 = vmatpush.bf16.msrb.mxu3 %v2004_v24  ;;  %v315_v29 = vld [vmem:[%s2282_s19 + $0x70] sm:$0xff] }
  0x19   : > { %v370_v25 = vpack.c.bf16 %v314_v23, %v313_v22  ;;  %v316_v30 = vld [vmem:[%s2282_s19 + $0x78] sm:$0xff]  ;;  %v317_v32 = vld [vmem:[%s2282_s19 + $0x80] sm:$0xff]  ;;  %v318_v33 = vld [vmem:[%s2282_s19 + $0x88] sm:$0xff] }
  0x1a   : > { %910 = vmatpush.bf16.msra.mxu1 %v2002_v27  ;;  %v371_v31 = vpack.c.bf16 %v316_v30, %v315_v29  ;;  %v372_v34 = vpack.c.bf16 %v318_v33, %v317_v32  ;;  %v319_v42 = vld [vmem:[%s2282_s19 + $0x90] sm:$0xff]  ;;  %v320_v43 = vld [vmem:[%s2282_s19 + $0x98] sm:$0xff]  ;;  %v321_v52 = vld [vmem:[%s2282_s19 + $0xa0] sm:$0xff] }
  0x1b   : > { %v373_v45 = vpack.c.bf16 %v320_v43, %v319_v42  ;;  %v322_v53 = vld [vmem:[%s2282_s19 + $0xa8] sm:$0xff]  ;;  %v323_v62 = vld [vmem:[%s2282_s19 + $0xb0] sm:$0xff]  ;;  %v324_v63 = vld [vmem:[%s2282_s19 + $0xb8] sm:$0xff] }
  0x1c   : > { %2012 = vmatpush.bf16.msrb.mxu3 %v2003_v26  ;;  %v374_v55 = vpack.c.bf16 %v322_v53, %v321_v52  ;;  %v375_v1 = vpack.c.bf16 %v324_v63, %v323_v62  ;;  %v325_v8 = vld [vmem:[%s2282_s19 + $0xc0] sm:$0xff]  ;;  %v328_v19 = vld [vmem:[%s2282_s19 + $0xd8] sm:$0xff]  ;;  %v330_v29 = vld [vmem:[%s2282_s19 + $0xe8] sm:$0xff] }
  0x1d   : > { %v334_v52 = vld [vmem:[%s2282_s19 + $0x108] sm:$0xff]  ;;  %v335_v62 = vld [vmem:[%s2282_s19 + $0x110] sm:$0xff]  ;;  %v336_v63 = vld [vmem:[%s2282_s19 + $0x118] sm:$0xff] }
  0x1e   : > { %911 = vmatpush.bf16.msra.mxu1 %v2001_v28 }
  0x20   : > { %2013 = vmatpush.bf16.msrb.mxu3 %v2002_v27 }
  0x24   : > { %2014 = vmatpush.bf16.msrb.mxu3 %v2001_v28  ;;  %v329_v28 = vld [vmem:[%s2282_s19 + $0xe0] sm:$0xff] }
  0x27   : > { %1866 = vmatmul.msk.bf16.gmra.mxu0 %vm407_vm1, %v365_v9  ;;  %v326_v9 = vld [vmem:[%s2282_s19 + $0xc8] sm:$0xff] }
  0x28   : > { %v376_v11 = vpack.c.bf16 %v326_v9, %v325_v8 }
  0x37   : > { %1867 = vmatmul.msk.bf16.gmra.mxu0 %vm407_vm1, %v366_v12 }
  0x47   : > { %1868 = vmatmul.msk.bf16.gmra.mxu0 %vm407_vm1, %v367_v15 }
  0x57   : > { %1869 = vmatmul.msk.bf16.gmra.mxu0 %vm407_vm1, %v368_v18  ;;  %v327_v18 = vld [vmem:[%s2282_s19 + $0xd0] sm:$0xff] }
  0x67   : > { %1870 = vmatmul.msk.bf16.gmra.mxu0 %vm407_vm1, %v369_v21  ;;  %v377_v21 = vpack.c.bf16 %v328_v19, %v327_v18 }
  0x77   : > { %1871 = vmatmul.msk.bf16.gmra.mxu0 %vm407_vm1, %v370_v25 }
  0x87   : > { %1872 = vmatmul.msk.bf16.gmra.mxu0 %vm407_vm1, %v371_v31  ;;  %v378_v31 = vpack.c.bf16 %v330_v29, %v329_v28 }
  0x94   : > { %v517_v35 = vpop.f32.mrf.mxu0 }
  0x95   : > { %v518_v37 = vadd.f32 %v2325_v36, %v517_v35 }
  0x97   : > { %1873 = vmatmul.msk.bf16.gmra.mxu0 %vm407_vm1, %v372_v34  ;;  %v676_v40 = vmax.f32 %v518_v37, 0.0 }
  0x9c   : > { %v519_v38 = vpop.f32.mrf.mxu0 }
  0x9d   : > { %v520_v39 = vadd.f32 %v2325_v36, %v519_v38 }
  0x9f   : > { %v677_v41 = vmax.f32 %v520_v39, 0.0  ;;  %v331_v39 = vld [vmem:[%s2282_s19 + $0xf0] sm:$0xff] }
  0xa1   : > { %v739_v44 = vpack.c.bf16 %v677_v41, %v676_v40  ;;  %v332_v40 = vld [vmem:[%s2282_s19 + $0xf8] sm:$0xff] }
  0xa2   : > { %v379_v42 = vpack.c.bf16 %v332_v40, %v331_v39 }
  0xa3   : > { %1913 = vmatmul.msk.bf16.vlgmr.msra.gmra.mxu1 %vm807_vm2, %v739_v44  ;;  %v2372_v44 = vld [vmem:[%s2962_s5 + $0x8] sm:$0xff] }
  0xa4   : > { %v522_v46 = vpop.f32.mrf.mxu0  ;;  %1290 = vmatpush.bf16.msra.mxu2 %v2372_v44 }
  0xa5   : > { %v523_v47 = vadd.f32 %v2325_v36, %v522_v46 }
  0xa7   : > { %1874 = vmatmul.msk.bf16.gmra.mxu0 %vm407_vm1, %v373_v45  ;;  %v678_v50 = vmax.f32 %v523_v47, 0.0  ;;  %v2379_v45 = vld [vmem:[%s2962_s5] sm:$0xff] }
  0xa8   : > { %1291 = vmatpush.bf16.msra.mxu2 %v2379_v45 }
  0xac   : > { %v524_v48 = vpop.f32.mrf.mxu0 }
  0xad   : > { %v525_v49 = vadd.f32 %v2325_v36, %v524_v48 }
  0xaf   : > { %v679_v51 = vmax.f32 %v525_v49, 0.0 }
  0xb1   : > { %v740_v54 = vpack.c.bf16 %v679_v51, %v678_v50  ;;  %v333_v51 = vld [vmem:[%s2282_s19 + $0x100] sm:$0xff] }
  0xb3   : > { %1914 = vmatmul.msk.bf16.gmra.mxu1 %vm807_vm2, %v740_v54  ;;  %v380_v54 = vpack.c.bf16 %v334_v52, %v333_v51 }
  0xb4   : > { %v527_v56 = vpop.f32.mrf.mxu0 }
  0xb5   : > { %v528_v57 = vadd.f32 %v2325_v36, %v527_v56 }
  0xb7   : > { %1875 = vmatmul.msk.bf16.gmra.mxu0 %vm407_vm1, %v374_v55  ;;  %v680_v60 = vmax.f32 %v528_v57, 0.0 }
  0xbc   : > { %v529_v58 = vpop.f32.mrf.mxu0 }
  0xbd   : > { %v530_v59 = vadd.f32 %v2325_v36, %v529_v58 }
  0xbf   : > { %v681_v61 = vmax.f32 %v530_v59, 0.0 }
  0xc1   : > { %v741_v0 = vpack.c.bf16 %v681_v61, %v680_v60 }
  0xc3   : > { %1915 = vmatmul.msk.bf16.gmra.mxu1 %vm807_vm2, %v741_v0 }
  0xc4   : > { %v532_v2 = vpop.f32.mrf.mxu0 }
  0xc5   : > { %v533_v3 = vadd.f32 %v2325_v36, %v532_v2  ;;  %v381_v2 = vpack.c.bf16 %v336_v63, %v335_v62 }
  0xc7   : > { %1876 = vmatmul.msk.bf16.gmra.mxu0 %vm407_vm1, %v375_v1  ;;  %v682_v6 = vmax.f32 %v533_v3, 0.0  ;;  %v2395_v1 = vld [vmem:[%s2961_s4] ss:$0 sm:$0xff] }
  0xcc   : > { %v534_v4 = vpop.f32.mrf.mxu0 }
  0xcd   : > { %v535_v5 = vadd.f32 %v2325_v36, %v534_v4 }
  0xcf   : > { %v683_v7 = vmax.f32 %v535_v5, 0.0 }
  0xd1   : > { %v742_v10 = vpack.c.bf16 %v683_v7, %v682_v6 }
  0xd3   : > { %1916 = vmatmul.msk.bf16.gmra.mxu1 %vm807_vm2, %v742_v10 }
  0xd4   : > { %v537_v12 = vpop.f32.mrf.mxu0 }
  0xd5   : > { %v538_v13 = vadd.f32 %v2325_v36, %v537_v12 }
  0xd7   : > { %1877 = vmatmul.msk.bf16.gmra.mxu0 %vm407_vm1, %v376_v11  ;;  %v684_v16 = vmax.f32 %v538_v13, 0.0 }
  0xdc   : > { %v539_v14 = vpop.f32.mrf.mxu0 }
  0xdd   : > { %v540_v15 = vadd.f32 %v2325_v36, %v539_v14 }
  0xdf   : > { %v685_v17 = vmax.f32 %v540_v15, 0.0 }
  0xe1   : > { %v743_v20 = vpack.c.bf16 %v685_v17, %v684_v16  ;;  %v337_v16 = vld [vmem:[%s2282_s19 + $0x120] sm:$0xff]  ;;  %v338_v17 = vld [vmem:[%s2282_s19 + $0x128] sm:$0xff] }
  0xe2   : > { %v382_v19 = vpack.c.bf16 %v338_v17, %v337_v16 }
  0xe3   : > { %1917 = vmatmul.msk.bf16.gmra.mxu1 %vm807_vm2, %v743_v20 }
  0xe4   : > { %v542_v22 = vpop.f32.mrf.mxu0 }
  0xe5   : > { %v543_v23 = vadd.f32 %v2325_v36, %v542_v22 }
  0xe7   : > { %1878 = vmatmul.msk.bf16.gmra.mxu0 %vm407_vm1, %v377_v21  ;;  %v686_v26 = vmax.f32 %v543_v23, 0.0 }
  0xec   : > { %v544_v24 = vpop.f32.mrf.mxu0 }
  0xed   : > { %v545_v25 = vadd.f32 %v2325_v36, %v544_v24 }
  0xef   : > { %v687_v27 = vmax.f32 %v545_v25, 0.0 }
  0xf1   : > { %v744_v30 = vpack.c.bf16 %v687_v27, %v686_v26 }
  0xf3   : > { %1918 = vmatmul.msk.bf16.gmra.mxu1 %vm807_vm2, %v744_v30 }
  0xf4   : > { %v547_v32 = vpop.f32.mrf.mxu0 }
  0xf5   : > { %v548_v33 = vadd.f32 %v2325_v36, %v547_v32 }
  0xf7   : > { %1879 = vmatmul.msk.bf16.gmra.mxu0 %vm407_vm1, %v378_v31  ;;  %v688_v37 = vmax.f32 %v548_v33, 0.0  ;;  %v339_v33 = vld [vmem:[%s2282_s19 + $0x130] sm:$0xff] }
  0xfc   : > { %v549_v34 = vpop.f32.mrf.mxu0 }
  0xfd   : > { %v550_v35 = vadd.f32 %v2325_v36, %v549_v34  ;;  %v340_v34 = vld [vmem:[%s2282_s19 + $0x138] sm:$0xff] }
  0xff   : > { %v689_v38 = vmax.f32 %v550_v35, 0.0 }
 0x101   : > { %v745_v41 = vpack.c.bf16 %v689_v38, %v688_v37  ;;  %v383_v37 = vpack.c.bf16 %v340_v34, %v339_v33 }
 0x103   : > { %1919 = vmatmul.msk.bf16.gmra.mxu1 %vm807_vm2, %v745_v41 }
 0x104   : > { %v552_v43 = vpop.f32.mrf.mxu0 }
 0x105   : > { %v553_v46 = vadd.f32 %v2325_v36, %v552_v43 }
 0x107   : > { %1880 = vmatmul.msk.bf16.gmra.mxu0 %vm407_vm1, %v379_v42  ;;  %v690_v49 = vmax.f32 %v553_v46, 0.0 }
 0x10c   : > { %v554_v47 = vpop.f32.mrf.mxu0 }
 0x10d   : > { %v555_v48 = vadd.f32 %v2325_v36, %v554_v47 }
 0x10f   : > { %v691_v50 = vmax.f32 %v555_v48, 0.0 }
 0x111   : > { %v746_v53 = vpack.c.bf16 %v691_v50, %v690_v49 }
 0x113   : > { %1920 = vmatmul.msk.bf16.gmra.mxu1 %vm807_vm2, %v746_v53  ;;  %v341_v53 = vld [vmem:[%s2282_s19 + $0x140] sm:$0xff] }
 0x114   : > { %v557_v55 = vpop.f32.mrf.mxu0 }
 0x115   : > { %v558_v56 = vadd.f32 %v2325_v36, %v557_v55 }
 0x117   : > { %1881 = vmatmul.msk.bf16.gmra.mxu0 %vm407_vm1, %v380_v54  ;;  %v692_v59 = vmax.f32 %v558_v56, 0.0  ;;  %v342_v54 = vld [vmem:[%s2282_s19 + $0x148] sm:$0xff] }
 0x118   : > { %v384_v56 = vpack.c.bf16 %v342_v54, %v341_v53 }
 0x11c   : > { %v559_v57 = vpop.f32.mrf.mxu0 }
 0x11d   : > { %v560_v58 = vadd.f32 %v2325_v36, %v559_v57 }
 0x11f   : > { %v693_v60 = vmax.f32 %v560_v58, 0.0 }
 0x120   : > { %v913_v61 = vpop.f32.mrf.mxu1 }
 0x121   : > { %v747_v0 = vpack.c.bf16 %v693_v60, %v692_v59  ;;  %v914_v4 = vadd.f32 %v2395_v1, %v913_v61 }
 0x123   : > { %1921 = vmatmul.msk.bf16.gmra.mxu1 %vm807_vm2, %v747_v0  ;;  %v1072_v7 = vmax.f32 %v914_v4, 0.0 }
 0x124   : > { %v562_v3 = vpop.f32.mrf.mxu0 }
 0x125   : > { %v563_v8 = vadd.f32 %v2325_v36, %v562_v3 }
 0x127   : > { %1882 = vmatmul.msk.bf16.gmra.mxu0 %vm407_vm1, %v381_v2  ;;  %v694_v13 = vmax.f32 %v563_v8, 0.0  ;;  %v344_v8 = vld [vmem:[%s2282_s19 + $0x158] sm:$0xff] }
 0x128   : > { %v915_v5 = vpop.f32.mrf.mxu1 }
 0x129   : > { %v916_v6 = vadd.f32 %v2395_v1, %v915_v5 }
 0x12b   : > { %v1073_v9 = vmax.f32 %v916_v6, 0.0 }
 0x12c   : > { %v564_v10 = vpop.f32.mrf.mxu0 }
 0x12d   : > { %v565_v11 = vadd.f32 %v2325_v36, %v564_v10  ;;  %v1135_v12 = vpack.c.bf16 %v1073_v9, %v1072_v7  ;;  %v343_v7 = vld [vmem:[%s2282_s19 + $0x150] sm:$0xff] }
 0x12e   : > { %v385_v10 = vpack.c.bf16 %v344_v8, %v343_v7  ;;  %v355_v7 = vld [vmem:[%s2282_s19 + $0x1b0] sm:$0xff]  ;;  %v356_v8 = vld [vmem:[%s2282_s19 + $0x1b8] sm:$0xff] }
 0x12f   : > { %v695_v14 = vmax.f32 %v565_v11, 0.0  ;;  %1953 = vmatmul.msk.bf16.vlgmr.msra.gmra.mxu2 %vm1187_vm3, %v1135_v12 }
 0x130   : > { %v918_v15 = vpop.f32.mrf.mxu1 }
 0x131   : > { %v748_v18 = vpack.c.bf16 %v695_v14, %v694_v13  ;;  %v919_v21 = vadd.f32 %v2395_v1, %v918_v15 }
 0x133   : > { %1922 = vmatmul.msk.bf16.gmra.mxu1 %vm807_vm2, %v748_v18  ;;  %v1074_v24 = vmax.f32 %v919_v21, 0.0 }
 0x134   : > { %v567_v20 = vpop.f32.mrf.mxu0 }
 0x135   : > { %v568_v25 = vadd.f32 %v2325_v36, %v567_v20 }
 0x137   : > { %1883 = vmatmul.msk.bf16.gmra.mxu0 %vm407_vm1, %v382_v19  ;;  %v696_v30 = vmax.f32 %v568_v25, 0.0  ;;  %v346_v25 = vld [vmem:[%s2282_s19 + $0x168] sm:$0xff] }
 0x138   : > { %v920_v22 = vpop.f32.mrf.mxu1 }
 0x139   : > { %v921_v23 = vadd.f32 %v2395_v1, %v920_v22 }
 0x13b   : > { %v1075_v26 = vmax.f32 %v921_v23, 0.0 }
 0x13c   : > { %v569_v27 = vpop.f32.mrf.mxu0 }
 0x13d   : > { %v570_v28 = vadd.f32 %v2325_v36, %v569_v27  ;;  %v1136_v29 = vpack.c.bf16 %v1075_v26, %v1074_v24  ;;  %v345_v24 = vld [vmem:[%s2282_s19 + $0x160] sm:$0xff] }
 0x13e   : > { %v386_v27 = vpack.c.bf16 %v346_v25, %v345_v24  ;;  %v357_v24 = vld [vmem:[%s2282_s19 + $0x1c0] sm:$0xff]  ;;  %v358_v25 = vld [vmem:[%s2282_s19 + $0x1c8] sm:$0xff] }
 0x13f   : > { %v697_v31 = vmax.f32 %v570_v28, 0.0  ;;  %1954 = vmatmul.msk.bf16.gmra.mxu2 %vm1187_vm3, %v1136_v29  ;;  %v351_v29 = vld [vmem:[%s2282_s19 + $0x190] sm:$0xff] }
 0x140   : > { %v923_v32 = vpop.f32.mrf.mxu1 }
 0x141   : > { %v749_v35 = vpack.c.bf16 %v697_v31, %v696_v30  ;;  %v924_v39 = vadd.f32 %v2395_v1, %v923_v32  ;;  %v352_v30 = vld [vmem:[%s2282_s19 + $0x198] sm:$0xff] }
 0x142   : > { %v389_v32 = vpack.c.bf16 %v352_v30, %v351_v29 }
 0x143   : > { %1923 = vmatmul.msk.bf16.gmra.mxu1 %vm807_vm2, %v749_v35  ;;  %v1076_v42 = vmax.f32 %v924_v39, 0.0 }
 0x144   : > { %v572_v38 = vpop.f32.mrf.mxu0  ;;  %1890 = vmatmul.msk.bf16.vlgmr.msra.gmra.mxu3 %vm407_vm1, %v389_v32 }
 0x145   : > { %v573_v43 = vadd.f32 %v2325_v36, %v572_v38  ;;  %2015 = vmatpush.bf16.msra.mxu3 %v2372_v44 }
 0x147   : > { %1884 = vmatmul.msk.bf16.gmra.mxu0 %vm407_vm1, %v383_v37  ;;  %v698_v50 = vmax.f32 %v573_v43, 0.0 }
 0x148   : > { %v925_v40 = vpop.f32.mrf.mxu1 }
 0x149   : > { %v926_v41 = vadd.f32 %v2395_v1, %v925_v40  ;;  %2016 = vmatpush.bf16.msra.mxu3 %v2379_v45 }
 0x14b   : > { %v1077_v46 = vmax.f32 %v926_v41, 0.0 }
 0x14c   : > { %v574_v47 = vpop.f32.mrf.mxu0 }
 0x14d   : > { %v575_v48 = vadd.f32 %v2325_v36, %v574_v47  ;;  %v1137_v49 = vpack.c.bf16 %v1077_v46, %v1076_v42  ;;  %v347_v47 = vld [vmem:[%s2282_s19 + $0x170] sm:$0xff] }
 0x14f   : > { %v699_v51 = vmax.f32 %v575_v48, 0.0  ;;  %1955 = vmatmul.msk.bf16.gmra.mxu2 %vm1187_vm3, %v1137_v49  ;;  %v348_v48 = vld [vmem:[%s2282_s19 + $0x178] sm:$0xff] }
 0x150   : > { %v928_v52 = vpop.f32.mrf.mxu1  ;;  %v387_v49 = vpack.c.bf16 %v348_v48, %v347_v47  ;;  %v359_v47 = vld [vmem:[%s2282_s19 + $0x1d0] sm:$0xff]  ;;  %v360_v48 = vld [vmem:[%s2282_s19 + $0x1d8] sm:$0xff] }
 0x151   : > { %v750_v55 = vpack.c.bf16 %v699_v51, %v698_v50  ;;  %v929_v58 = vadd.f32 %v2395_v1, %v928_v52  ;;  %v353_v51 = vld [vmem:[%s2282_s19 + $0x1a0] sm:$0xff]  ;;  %v354_v52 = vld [vmem:[%s2282_s19 + $0x1a8] sm:$0xff] }
 0x152   : > { %v390_v45 = vpack.c.bf16 %v354_v52, %v353_v51 }
 0x153   : > { %1924 = vmatmul.msk.bf16.gmra.mxu1 %vm807_vm2, %v750_v55  ;;  %v1078_v61 = vmax.f32 %v929_v58, 0.0 }
 0x154   : > { %v577_v57 = vpop.f32.mrf.mxu0  ;;  %1891 = vmatmul.msk.bf16.gmra.mxu3 %vm407_vm1, %v390_v45 }
 0x155   : > { %v578_v62 = vadd.f32 %v2325_v36, %v577_v57 }
 0x157   : > { %1885 = vmatmul.msk.bf16.gmra.mxu0 %vm407_vm1, %v384_v56  ;;  %v700_v4 = vmax.f32 %v578_v62, 0.0 }
 0x158   : > { %v930_v59 = vpop.f32.mrf.mxu1 }
 0x159   : > { %v931_v60 = vadd.f32 %v2395_v1, %v930_v59 }
 0x15b   : > { %v1079_v63 = vmax.f32 %v931_v60, 0.0 }
 0x15c   : > { %v579_v0 = vpop.f32.mrf.mxu0 }
 0x15d   : > { %v580_v2 = vadd.f32 %v2325_v36, %v579_v0  ;;  %v1138_v3 = vpack.c.bf16 %v1079_v63, %v1078_v61 }
 0x15f   : > { %v701_v5 = vmax.f32 %v580_v2, 0.0  ;;  %1956 = vmatmul.msk.bf16.gmra.mxu2 %vm1187_vm3, %v1138_v3  ;;  %v349_v2 = vld [vmem:[%s2282_s19 + $0x180] sm:$0xff]  ;;  %v350_v3 = vld [vmem:[%s2282_s19 + $0x188] sm:$0xff] }
 0x160   : > { %v933_v6 = vpop.f32.mrf.mxu1 }
 0x161   : > { %v751_v9 = vpack.c.bf16 %v701_v5, %v700_v4  ;;  %v934_v12 = vadd.f32 %v2395_v1, %v933_v6  ;;  %v388_v5 = vpack.c.bf16 %v350_v3, %v349_v2  ;;  %v361_v3 = vld [vmem:[%s2282_s19 + $0x1e0] sm:$0xff] }
 0x163   : > { %1925 = vmatmul.msk.bf16.gmra.mxu1 %vm807_vm2, %v751_v9  ;;  %v1080_v15 = vmax.f32 %v934_v12, 0.0 }
 0x164   : > { %v582_v11 = vpop.f32.mrf.mxu0 }
 0x165   : > { %v583_v16 = vadd.f32 %v2325_v36, %v582_v11 }
 0x167   : > { %1886 = vmatmul.msk.bf16.gmra.mxu0 %vm407_vm1, %v385_v10  ;;  %v702_v21 = vmax.f32 %v583_v16, 0.0  ;;  %v391_v10 = vpack.c.bf16 %v356_v8, %v355_v7 }
 0x168   : > { %v935_v13 = vpop.f32.mrf.mxu1 }
 0x169   : > { %v936_v14 = vadd.f32 %v2395_v1, %v935_v13  ;;  %1892 = vmatmul.msk.bf16.gmra.mxu3 %vm407_vm1, %v391_v10 }
 0x16b   : > { %v1081_v17 = vmax.f32 %v936_v14, 0.0 }
 0x16c   : > { %v584_v18 = vpop.f32.mrf.mxu0 }
 0x16d   : > { %v585_v19 = vadd.f32 %v2325_v36, %v584_v18  ;;  %v1139_v20 = vpack.c.bf16 %v1081_v17, %v1080_v15 }
 0x16f   : > { %v703_v22 = vmax.f32 %v585_v19, 0.0  ;;  %1957 = vmatmul.msk.bf16.gmra.mxu2 %vm1187_vm3, %v1139_v20 }
 0x170   : > { %v938_v23 = vpop.f32.mrf.mxu1 }
 0x171   : > { %v752_v26 = vpack.c.bf16 %v703_v22, %v702_v21  ;;  %v939_v31 = vadd.f32 %v2395_v1, %v938_v23 }
 0x173   : > { %1926 = vmatmul.msk.bf16.gmra.mxu1 %vm807_vm2, %v752_v26  ;;  %v1082_v35 = vmax.f32 %v939_v31, 0.0 }
 0x174   : > { %v587_v28 = vpop.f32.mrf.mxu0 }
 0x175   : > { %v588_v37 = vadd.f32 %v2325_v36, %v587_v28 }
 0x177   : > { %1887 = vmatmul.msk.bf16.gmra.mxu0 %vm407_vm1, %v386_v27  ;;  %v704_v42 = vmax.f32 %v588_v37, 0.0  ;;  %v392_v27 = vpack.c.bf16 %v358_v25, %v357_v24 }
 0x178   : > { %v940_v33 = vpop.f32.mrf.mxu1 }
 0x179   : > { %v941_v34 = vadd.f32 %v2395_v1, %v940_v33  ;;  %1893 = vmatmul.msk.bf16.gmra.mxu3 %vm407_vm1, %v392_v27 }
 0x17b   : > { %v1083_v38 = vmax.f32 %v941_v34, 0.0 }
 0x17c   : > { %v589_v39 = vpop.f32.mrf.mxu0 }
 0x17d   : > { %v590_v40 = vadd.f32 %v2325_v36, %v589_v39  ;;  %v1140_v41 = vpack.c.bf16 %v1083_v38, %v1082_v35  ;;  %v2491_v39 = vld [vmem:[%s2963_s6] ss:$0 sm:$0xff] }
 0x17f   : > { %v705_v43 = vmax.f32 %v590_v40, 0.0  ;;  %1958 = vmatmul.msk.bf16.gmra.mxu2 %vm1187_vm3, %v1140_v41 }
 0x180   : > { %v943_v46 = vpop.f32.mrf.mxu1 }
 0x181   : > { %v753_v44 = vpack.c.bf16 %v705_v43, %v704_v42  ;;  %v944_v53 = vadd.f32 %v2395_v1, %v943_v46 }
 0x183   : > { %1927 = vmatmul.msk.bf16.gmra.mxu1 %vm807_vm2, %v753_v44  ;;  %v1084_v56 = vmax.f32 %v944_v53, 0.0 }
 0x184   : > { %v592_v50 = vpop.f32.mrf.mxu0 }
 0x185   : > { %v593_v57 = vadd.f32 %v2325_v36, %v592_v50 }
 0x187   : > { %1888 = vmatmul.msk.bf16.gmra.mxu0 %vm407_vm1, %v387_v49  ;;  %v706_v62 = vmax.f32 %v593_v57, 0.0  ;;  %v393_v49 = vpack.c.bf16 %v360_v48, %v359_v47 }
 0x188   : > { %v945_v54 = vpop.f32.mrf.mxu1 }
 0x189   : > { %v946_v55 = vadd.f32 %v2395_v1, %v945_v54  ;;  %1894 = vmatmul.msk.bf16.gmra.mxu3 %vm407_vm1, %v393_v49 }
 0x18b   : > { %v1085_v58 = vmax.f32 %v946_v55, 0.0 }
 0x18c   : > { %v594_v59 = vpop.f32.mrf.mxu0 }
 0x18d   : > { %v595_v60 = vadd.f32 %v2325_v36, %v594_v59  ;;  %v1141_v61 = vpack.c.bf16 %v1085_v58, %v1084_v56 }
 0x18f   : > { %v707_v63 = vmax.f32 %v595_v60, 0.0  ;;  %1959 = vmatmul.msk.bf16.gmra.mxu2 %vm1187_vm3, %v1141_v61 }
 0x190   : > { %v948_v0 = vpop.f32.mrf.mxu1 }
 0x191   : > { %v754_v4 = vpack.c.bf16 %v707_v63, %v706_v62  ;;  %v949_v9 = vadd.f32 %v2395_v1, %v948_v0 }
 0x193   : > { %1928 = vmatmul.msk.bf16.gmra.mxu1 %vm807_vm2, %v754_v4  ;;  %v1086_v13 = vmax.f32 %v949_v9, 0.0  ;;  %v362_v4 = vld [vmem:[%s2282_s19 + $0x1e8] sm:$0xff] }
 0x194   : > { %v597_v6 = vpop.f32.mrf.mxu0 }
 0x195   : > { %v598_v14 = vadd.f32 %v2325_v36, %v597_v6  ;;  %v394_v6 = vpack.c.bf16 %v362_v4, %v361_v3 }
 0x197   : > { %1889 = vmatmul.msk.bf16.gmra.mxu0 %vm407_vm1, %v388_v5  ;;  %v708_v19 = vmax.f32 %v598_v14, 0.0 }
 0x198   : > { %v950_v11 = vpop.f32.mrf.mxu1 }
 0x199   : > { %v951_v12 = vadd.f32 %v2395_v1, %v950_v11  ;;  %1895 = vmatmul.msk.bf16.gmra.mxu3 %vm407_vm1, %v394_v6 }
 0x19b   : > { %v1087_v15 = vmax.f32 %v951_v12, 0.0 }
 0x19c   : > { %v599_v16 = vpop.f32.mrf.mxu0 }
 0x19d   : > { %v600_v17 = vadd.f32 %v2325_v36, %v599_v16  ;;  %v1142_v18 = vpack.c.bf16 %v1087_v15, %v1086_v13 }
 0x19f   : > { %v709_v20 = vmax.f32 %v600_v17, 0.0  ;;  %1960 = vmatmul.msk.bf16.gmra.mxu2 %vm1187_vm3, %v1142_v18 }
 0x1a0   : > { %v953_v21 = vpop.f32.mrf.mxu1 }
 0x1a1   : > { %v755_v22 = vpack.c.bf16 %v709_v20, %v708_v19  ;;  %v954_v26 = vadd.f32 %v2395_v1, %v953_v21 }
 0x1a3   : > { %1929 = vmatmul.msk.bf16.gmra.mxu1 %vm807_vm2, %v755_v22  ;;  %v1088_v30 = vmax.f32 %v954_v26, 0.0 }
 0x1a4   : > { %v602_v23 = vpop.f32.mrf.mxu0 }
 0x1a5   : > { %v603_v31 = vadd.f32 %v2325_v36, %v602_v23 }
 0x1a7   : > { %v710_v37 = vmax.f32 %v603_v31, 0.0 }
 0x1a8   : > { %v955_v28 = vpop.f32.mrf.mxu1 }
 0x1a9   : > { %v956_v29 = vadd.f32 %v2395_v1, %v955_v28 }
 0x1ab   : > { %v1089_v32 = vmax.f32 %v956_v29, 0.0 }
 0x1ac   : > { %v604_v33 = vpop.f32.mrf.mxu0 }
 0x1ad   : > { %v605_v34 = vadd.f32 %v2325_v36, %v604_v33  ;;  %v1143_v35 = vpack.c.bf16 %v1089_v32, %v1088_v30 }
 0x1af   : > { %v711_v38 = vmax.f32 %v605_v34, 0.0  ;;  %1961 = vmatmul.msk.bf16.gmra.mxu2 %vm1187_vm3, %v1143_v35 }
 0x1b0   : > { %v958_v40 = vpop.f32.mrf.mxu1 }
 0x1b1   : > { %v756_v41 = vpack.c.bf16 %v711_v38, %v710_v37  ;;  %v959_v44 = vadd.f32 %v2395_v1, %v958_v40 }
 0x1b2   : > { %v1293_v42 = vpop.f32.mrf.mxu2 }
 0x1b3   : > { %v1294_v43 = vadd.f32 %v2491_v39, %v1293_v42  ;;  %1930 = vmatmul.msk.bf16.gmra.mxu1 %vm807_vm2, %v756_v41  ;;  %v1090_v53 = vmax.f32 %v959_v44, 0.0 }
 0x1b4   : > { %v607_v46 = vpop.f32.mrf.mxu0 }
 0x1b5   : > { %1453 = vst.msk [vmem:[%s2495_s24] sm:$0xff] %vm1452_vm4, %v1294_v43  ;;  %v608_v45 = vadd.f32 %v2325_v36, %v607_v46  ;;  %v363_v46 = vld [vmem:[%s2282_s19 + $0x1f0] sm:$0xff] }
 0x1b6   : > { %v395_v48 = vpack.c.bf16 %v363_v46, %v363_v46 }
 0x1b7   : > { %v712_v59 = vmax.f32 %v608_v45, 0.0 }
 0x1b8   : > { %v960_v50 = vpop.f32.mrf.mxu1  ;;  %1896 = vmatmul.msk.bf16.gmra.mxu3 %vm407_vm1, %v395_v48 }
 0x1b9   : > { %v961_v51 = vadd.f32 %v2395_v1, %v960_v50 }
 0x1ba   : > { %v1295_v52 = vpop.f32.mrf.mxu2 }
 0x1bb   : > { %v1091_v54 = vmax.f32 %v961_v51, 0.0  ;;  %v1296_v55 = vadd.f32 %v2491_v39, %v1295_v52 }
 0x1bc   : > { %v609_v56 = vpop.f32.mrf.mxu0 }
 0x1bd   : > { %1454 = vst.msk [vmem:[%s2495_s24 + $0x8] sm:$0xff] %vm1452_vm4, %v1296_v55  ;;  %v610_v57 = vadd.f32 %v2325_v36, %v609_v56  ;;  %v1144_v58 = vpack.c.bf16 %v1091_v54, %v1090_v53 }
 0x1bf   : > { %v713_v60 = vmax.f32 %v610_v57, 0.0  ;;  %1962 = vmatmul.msk.bf16.gmra.mxu2 %vm1187_vm3, %v1144_v58 }
 0x1c0   : > { %v963_v61 = vpop.f32.mrf.mxu1 }
 0x1c1   : > { %v757_v62 = vpack.c.bf16 %v713_v60, %v712_v59  ;;  %v964_v5 = vadd.f32 %v2395_v1, %v963_v61 }
 0x1c2   : > { %v1298_v63 = vpop.f32.mrf.mxu2 }
 0x1c3   : > { %v1299_v0 = vadd.f32 %v2491_v39, %v1298_v63  ;;  %1931 = vmatmul.msk.bf16.gmra.mxu1 %vm807_vm2, %v757_v62  ;;  %v1092_v10 = vmax.f32 %v964_v5, 0.0 }
 0x1c4   : > { %v612_v2 = vpop.f32.mrf.mxu0 }
 0x1c5   : > { %1455 = vst.msk [vmem:[%s2495_s24 + $0x10] sm:$0xff] %vm1452_vm4, %v1299_v0  ;;  %v613_v11 = vadd.f32 %v2325_v36, %v612_v2 }
 0x1c7   : > { %v714_v17 = vmax.f32 %v613_v11, 0.0 }
 0x1c8   : > { %v965_v7 = vpop.f32.mrf.mxu1 }
 0x1c9   : > { %v966_v8 = vadd.f32 %v2395_v1, %v965_v7 }
 0x1ca   : > { %v1300_v9 = vpop.f32.mrf.mxu2 }
 0x1cb   : > { %v1093_v12 = vmax.f32 %v966_v8, 0.0  ;;  %v1301_v13 = vadd.f32 %v2491_v39, %v1300_v9 }
 0x1cc   : > { %v614_v14 = vpop.f32.mrf.mxu0 }
 0x1cd   : > { %1456 = vst.msk [vmem:[%s2495_s24 + $0x18] sm:$0xff] %vm1452_vm4, %v1301_v13  ;;  %v615_v15 = vadd.f32 %v2325_v36, %v614_v14  ;;  %v1145_v16 = vpack.c.bf16 %v1093_v12, %v1092_v10  ;;  %v2559_v10 = vpop.f32.mrf.mxu3 }
 0x1cf   : > { %v715_v18 = vmax.f32 %v615_v15, 0.0  ;;  %1963 = vmatmul.msk.bf16.gmra.mxu2 %vm1187_vm3, %v1145_v16 }
 0x1d0   : > { %v968_v19 = vpop.f32.mrf.mxu1 }
 0x1d1   : > { %v758_v20 = vpack.c.bf16 %v715_v18, %v714_v17  ;;  %v969_v24 = vadd.f32 %v2395_v1, %v968_v19 }
 0x1d2   : > { %v1303_v21 = vpop.f32.mrf.mxu2 }
 0x1d3   : > { %v1304_v22 = vadd.f32 %v2491_v39, %v1303_v21  ;;  %1932 = vmatmul.msk.bf16.gmra.mxu1 %vm807_vm2, %v758_v20  ;;  %v1094_v28 = vmax.f32 %v969_v24, 0.0 }
 0x1d4   : > { %v617_v23 = vpop.f32.mrf.mxu0 }
 0x1d5   : > { %1457 = vst.msk [vmem:[%s2495_s24 + $0x20] sm:$0xff] %vm1452_vm4, %v1304_v22  ;;  %v618_v29 = vadd.f32 %v2325_v36, %v617_v23  ;;  %v644_v20 = vpop.f32.mrf.mxu3 }
 0x1d7   : > { %v716_v35 = vmax.f32 %v618_v29, 0.0 }
 0x1d8   : > { %v970_v25 = vpop.f32.mrf.mxu1 }
 0x1d9   : > { %v971_v26 = vadd.f32 %v2395_v1, %v970_v25 }
 0x1da   : > { %v1305_v27 = vpop.f32.mrf.mxu2 }
 0x1db   : > { %v1095_v30 = vmax.f32 %v971_v26, 0.0  ;;  %v1306_v31 = vadd.f32 %v2491_v39, %v1305_v27 }
 0x1dc   : > { %v619_v32 = vpop.f32.mrf.mxu0 }
 0x1dd   : > { %1458 = vst.msk [vmem:[%s2495_s24 + $0x28] sm:$0xff] %vm1452_vm4, %v1306_v31  ;;  %v620_v33 = vadd.f32 %v2325_v36, %v619_v32  ;;  %v1146_v34 = vpack.c.bf16 %v1095_v30, %v1094_v28  ;;  %v647_v30 = vpop.f32.mrf.mxu3 }
 0x1df   : > { %v717_v37 = vmax.f32 %v620_v33, 0.0  ;;  %1964 = vmatmul.msk.bf16.gmra.mxu2 %vm1187_vm3, %v1146_v34 }
 0x1e0   : > { %v973_v38 = vpop.f32.mrf.mxu1 }
 0x1e1   : > { %v759_v40 = vpack.c.bf16 %v717_v37, %v716_v35  ;;  %v974_v47 = vadd.f32 %v2395_v1, %v973_v38 }
 0x1e2   : > { %v1308_v41 = vpop.f32.mrf.mxu2 }
 0x1e3   : > { %v1309_v42 = vadd.f32 %v2491_v39, %v1308_v41  ;;  %1933 = vmatmul.msk.bf16.gmra.mxu1 %vm807_vm2, %v759_v40  ;;  %v1096_v51 = vmax.f32 %v974_v47, 0.0 }
 0x1e4   : > { %v622_v43 = vpop.f32.mrf.mxu0 }
 0x1e5   : > { %1459 = vst.msk [vmem:[%s2495_s24 + $0x30] sm:$0xff] %vm1452_vm4, %v1309_v42  ;;  %v623_v52 = vadd.f32 %v2325_v36, %v622_v43  ;;  %v649_v42 = vpop.f32.mrf.mxu3 }
 0x1e7   : > { %v718_v57 = vmax.f32 %v623_v52, 0.0 }
 0x1e8   : > { %v975_v44 = vpop.f32.mrf.mxu1 }
 0x1e9   : > { %v976_v49 = vadd.f32 %v2395_v1, %v975_v44 }
 0x1ea   : > { %v1310_v50 = vpop.f32.mrf.mxu2 }
 0x1eb   : > { %v1097_v53 = vmax.f32 %v976_v49, 0.0  ;;  %v1311_v45 = vadd.f32 %v2491_v39, %v1310_v50 }
 0x1ec   : > { %v624_v54 = vpop.f32.mrf.mxu0 }
 0x1ed   : > { %v1147_v55 = vpack.c.bf16 %v1097_v53, %v1096_v51  ;;  %1460 = vst.msk [vmem:[%s2495_s24 + $0x38] sm:$0xff] %vm1452_vm4, %v1311_v45  ;;  %v625_v56 = vadd.f32 %v2325_v36, %v624_v54  ;;  %v652_v54 = vpop.f32.mrf.mxu3 }
 0x1ef   : > { %v719_v58 = vmax.f32 %v625_v56, 0.0  ;;  %1965 = vmatmul.msk.bf16.gmra.mxu2 %vm1187_vm3, %v1147_v55 }
 0x1f0   : > { %v978_v59 = vpop.f32.mrf.mxu1 }
 0x1f1   : > { %v760_v60 = vpack.c.bf16 %v719_v58, %v718_v57  ;;  %v979_v0 = vadd.f32 %v2395_v1, %v978_v59 }
 0x1f2   : > { %v1313_v61 = vpop.f32.mrf.mxu2 }
 0x1f3   : > { %v1314_v62 = vadd.f32 %v2491_v39, %v1313_v61  ;;  %1934 = vmatmul.msk.bf16.gmra.mxu1 %vm807_vm2, %v760_v60  ;;  %v1098_v5 = vmax.f32 %v979_v0, 0.0  ;;  %v643_v0 = vadd.f32 %v2325_v36, %v2559_v10 }
 0x1f4   : > { %v627_v63 = vpop.f32.mrf.mxu0 }
 0x1f5   : > { %1461 = vst.msk [vmem:[%s2495_s24 + $0x40] sm:$0xff] %vm1452_vm4, %v1314_v62  ;;  %v628_v6 = vadd.f32 %v2325_v36, %v627_v63  ;;  %v654_v63 = vpop.f32.mrf.mxu3 }
 0x1f7   : > { %v720_v13 = vmax.f32 %v628_v6, 0.0 }
 0x1f8   : > { %v980_v2 = vpop.f32.mrf.mxu1 }
 0x1f9   : > { %v981_v3 = vadd.f32 %v2395_v1, %v980_v2  ;;  %v645_v2 = vadd.f32 %v2325_v36, %v644_v20 }
 0x1fa   : > { %v1315_v4 = vpop.f32.mrf.mxu2 }
 0x1fb   : > { %v1099_v7 = vmax.f32 %v981_v3, 0.0  ;;  %v1316_v8 = vadd.f32 %v2491_v39, %v1315_v4 }
 0x1fc   : > { %v629_v9 = vpop.f32.mrf.mxu0 }
 0x1fd   : > { %v1148_v11 = vpack.c.bf16 %v1099_v7, %v1098_v5  ;;  %1462 = vst.msk [vmem:[%s2495_s24 + $0x48] sm:$0xff] %vm1452_vm4, %v1316_v8  ;;  %v630_v12 = vadd.f32 %v2325_v36, %v629_v9  ;;  %v726_v8 = vmax.f32 %v643_v0, 0.0  ;;  %v727_v9 = vmax.f32 %v645_v2, 0.0 }
 0x1ff   : > { %v721_v14 = vmax.f32 %v630_v12, 0.0  ;;  %1966 = vmatmul.msk.bf16.gmra.mxu2 %vm1187_vm3, %v1148_v11 }
 0x200   : > { %v983_v15 = vpop.f32.mrf.mxu1 }
 0x201   : > { %v761_v16 = vpack.c.bf16 %v721_v14, %v720_v13  ;;  %v984_v21 = vadd.f32 %v2395_v1, %v983_v15  ;;  %v764_v13 = vpack.c.bf16 %v727_v9, %v726_v8  ;;  %v657_v14 = vpop.f32.mrf.mxu3 }
 0x202   : > { %v1318_v17 = vpop.f32.mrf.mxu2 }
 0x203   : > { %v1319_v18 = vadd.f32 %v2491_v39, %v1318_v17  ;;  %1935 = vmatmul.msk.bf16.gmra.mxu1 %vm807_vm2, %v761_v16  ;;  %v1100_v25 = vmax.f32 %v984_v21, 0.0 }
 0x204   : > { %v632_v19 = vpop.f32.mrf.mxu0 }
 0x205   : > { %1463 = vst.msk [vmem:[%s2495_s24 + $0x50] sm:$0xff] %vm1452_vm4, %v1319_v18  ;;  %v633_v26 = vadd.f32 %v2325_v36, %v632_v19  ;;  %v648_v18 = vadd.f32 %v2325_v36, %v647_v30  ;;  %v650_v19 = vadd.f32 %v2325_v36, %v649_v42 }
 0x207   : > { %v722_v33 = vmax.f32 %v633_v26, 0.0  ;;  %v728_v26 = vmax.f32 %v648_v18, 0.0 }
 0x208   : > { %v985_v22 = vpop.f32.mrf.mxu1 }
 0x209   : > { %v986_v23 = vadd.f32 %v2395_v1, %v985_v22 }
 0x20a   : > { %v1320_v24 = vpop.f32.mrf.mxu2 }
 0x20b   : > { %v1101_v27 = vmax.f32 %v986_v23, 0.0  ;;  %v1321_v28 = vadd.f32 %v2491_v39, %v1320_v24 }
 0x20c   : > { %v634_v29 = vpop.f32.mrf.mxu0 }
 0x20d   : > { %v1149_v31 = vpack.c.bf16 %v1101_v27, %v1100_v25  ;;  %1464 = vst.msk [vmem:[%s2495_s24 + $0x58] sm:$0xff] %vm1452_vm4, %v1321_v28  ;;  %v635_v32 = vadd.f32 %v2325_v36, %v634_v29  ;;  %v659_v25 = vpop.f32.mrf.mxu3  ;;  %v729_v27 = vmax.f32 %v650_v19, 0.0 }
 0x20f   : > { %v723_v34 = vmax.f32 %v635_v32, 0.0  ;;  %1967 = vmatmul.msk.bf16.gmra.mxu2 %vm1187_vm3, %v1149_v31  ;;  %v765_v30 = vpack.c.bf16 %v729_v27, %v728_v26 }
 0x210   : > { %v988_v35 = vpop.f32.mrf.mxu1 }
 0x211   : > { %v762_v37 = vpack.c.bf16 %v723_v34, %v722_v33  ;;  %v989_v43 = vadd.f32 %v2395_v1, %v988_v35  ;;  %v2622_v35 = vld [vmem:[%s2959_s2] ss:$0 sm:$0xff] }
 0x212   : > { %v1323_v38 = vpop.f32.mrf.mxu2 }
 0x213   : > { %v1324_v40 = vadd.f32 %v2491_v39, %v1323_v38  ;;  %1936 = vmatmul.msk.bf16.gmra.mxu1 %vm807_vm2, %v762_v37  ;;  %v1102_v44 = vmax.f32 %v989_v43, 0.0  ;;  %v653_v37 = vadd.f32 %v2622_v35, %v652_v54  ;;  %v655_v38 = vadd.f32 %v2622_v35, %v654_v63 }
 0x214   : > { %v637_v41 = vpop.f32.mrf.mxu0 }
 0x215   : > { %1465 = vst.msk [vmem:[%s2495_s24 + $0x60] sm:$0xff] %vm1452_vm4, %v1324_v40  ;;  %v638_v49 = vadd.f32 %v2325_v36, %v637_v41  ;;  %v662_v32 = vpop.f32.mrf.mxu3 }
 0x217   : > { %v724_v55 = vmax.f32 %v638_v49, 0.0 }
 0x218   : > { %v990_v46 = vpop.f32.mrf.mxu1 }
 0x219   : > { %v991_v47 = vadd.f32 %v2395_v1, %v990_v46 }
 0x21a   : > { %v1325_v48 = vpop.f32.mrf.mxu2 }
 0x21b   : > { %v1103_v50 = vmax.f32 %v991_v47, 0.0  ;;  %v1326_v51 = vadd.f32 %v2491_v39, %v1325_v48  ;;  %v730_v47 = vmax.f32 %v653_v37, 0.0  ;;  %v731_v48 = vmax.f32 %v655_v38, 0.0 }
 0x21c   : > { %v639_v52 = vpop.f32.mrf.mxu0 }
 0x21d   : > { %v1150_v53 = vpack.c.bf16 %v1103_v50, %v1102_v44  ;;  %1466 = vst.msk [vmem:[%s2495_s24 + $0x68] sm:$0xff] %vm1452_vm4, %v1326_v51  ;;  %v640_v45 = vadd.f32 %v2325_v36, %v639_v52  ;;  %v664_v50 = vpop.f32.mrf.mxu3  ;;  %v766_v51 = vpack.c.bf16 %v731_v48, %v730_v47 }
 0x21f   : > { %v725_v56 = vmax.f32 %v640_v45, 0.0  ;;  %1968 = vmatmul.msk.bf16.gmra.mxu2 %vm1187_vm3, %v1150_v53 }
 0x220   : > { %v993_v57 = vpop.f32.mrf.mxu1 }
 0x221   : > { %v763_v58 = vpack.c.bf16 %v725_v56, %v724_v55  ;;  %v994_v61 = vadd.f32 %v2395_v1, %v993_v57  ;;  %v658_v55 = vadd.f32 %v2622_v35, %v657_v14  ;;  %v660_v56 = vadd.f32 %v2622_v35, %v659_v25 }
 0x222   : > { %v1328_v59 = vpop.f32.mrf.mxu2 }
 0x223   : > { %v1329_v60 = vadd.f32 %v2491_v39, %v1328_v59  ;;  %1937 = vmatmul.msk.bf16.vlgmr.msrb.gmra.mxu3 %vm807_vm2, %v763_v58  ;;  %v1104_v5 = vmax.f32 %v994_v61, 0.0  ;;  %v732_v63 = vmax.f32 %v658_v55, 0.0  ;;  %v733_v0 = vmax.f32 %v660_v56, 0.0 }
 0x225   : > { %1467 = vst.msk [vmem:[%s2495_s24 + $0x70] sm:$0xff] %vm1452_vm4, %v1329_v60  ;;  %v667_v59 = vpop.f32.mrf.mxu3 }
 0x228   : > { %v995_v62 = vpop.f32.mrf.mxu1 }
 0x229   : > { %v996_v3 = vadd.f32 %v2395_v1, %v995_v62 }
 0x22a   : > { %v1330_v4 = vpop.f32.mrf.mxu2 }
 0x22b   : > { %v1105_v6 = vmax.f32 %v996_v3, 0.0  ;;  %v1331_v7 = vadd.f32 %v2491_v39, %v1330_v4  ;;  %v767_v4 = vpack.c.bf16 %v733_v0, %v732_v63 }
 0x22d   : > { %v1151_v11 = vpack.c.bf16 %v1105_v6, %v1104_v5  ;;  %1468 = vst.msk [vmem:[%s2495_s24 + $0x78] sm:$0xff] %vm1452_vm4, %v1331_v7  ;;  %v669_v7 = vpop.f32.mrf.mxu3 }
 0x22f   : > { %1969 = vmatmul.msk.bf16.gmra.mxu2 %vm1187_vm3, %v1151_v11  ;;  %v663_v11 = vadd.f32 %v2622_v35, %v662_v32 }
 0x230   : > { %v998_v12 = vpop.f32.mrf.mxu1 }
 0x231   : > { %v999_v16 = vadd.f32 %v2395_v1, %v998_v12  ;;  %v665_v12 = vadd.f32 %v2622_v35, %v664_v50  ;;  %v734_v18 = vmax.f32 %v663_v11, 0.0 }
 0x232   : > { %v1333_v10 = vpop.f32.mrf.mxu2 }
 0x233   : > { %v1334_v15 = vadd.f32 %v2491_v39, %v1333_v10  ;;  %1938 = vmatmul.msk.bf16.gmra.mxu3 %vm807_vm2, %v764_v13  ;;  %v1106_v22 = vmax.f32 %v999_v16, 0.0  ;;  %v735_v19 = vmax.f32 %v665_v12, 0.0 }
 0x235   : > { %1469 = vst.msk [vmem:[%s2495_s24 + $0x80] sm:$0xff] %vm1452_vm4, %v1334_v15 }
 0x238   : > { %v1000_v17 = vpop.f32.mrf.mxu1 }
 0x239   : > { %v1001_v20 = vadd.f32 %v2395_v1, %v1000_v17 }
 0x23a   : > { %v1335_v21 = vpop.f32.mrf.mxu2 }
 0x23b   : > { %v1107_v23 = vmax.f32 %v1001_v20, 0.0  ;;  %v1336_v24 = vadd.f32 %v2491_v39, %v1335_v21  ;;  %v672_v17 = vpop.f32.mrf.mxu3 }
 0x23c   : > { %v673_v47 = vadd.f32 %v2622_v35, %v672_v17 }
 0x23d   : > { %v1152_v28 = vpack.c.bf16 %v1107_v23, %v1106_v22  ;;  %1470 = vst.msk [vmem:[%s2495_s24 + $0x88] sm:$0xff] %vm1452_vm4, %v1336_v24  ;;  %v768_v22 = vpack.c.bf16 %v735_v19, %v734_v18 }
 0x23f   : > { %1970 = vmatmul.msk.bf16.gmra.mxu2 %vm1187_vm3, %v1152_v28  ;;  %v668_v28 = vadd.f32 %v2622_v35, %v667_v59 }
 0x240   : > { %v1003_v29 = vpop.f32.mrf.mxu1 }
 0x241   : > { %v1004_v33 = vadd.f32 %v2395_v1, %v1003_v29  ;;  %v670_v29 = vadd.f32 %v2622_v35, %v669_v7 }
 0x242   : > { %v1338_v31 = vpop.f32.mrf.mxu2 }
 0x243   : > { %v1339_v36 = vadd.f32 %v2491_v39, %v1338_v31  ;;  %1939 = vmatmul.msk.bf16.gmra.mxu3 %vm807_vm2, %v765_v30  ;;  %v1108_v42 = vmax.f32 %v1004_v33, 0.0  ;;  %v674_v25 = vpop.f32.mrf.mxu3  ;;  %v737_v37 = vmax.f32 %v670_v29, 0.0 }
 0x245   : > { %1471 = vst.msk [vmem:[%s2495_s24 + $0x90] sm:$0xff] %vm1452_vm4, %v1339_v36 }
 0x248   : > { %v1005_v34 = vpop.f32.mrf.mxu1 }
 0x249   : > { %v1006_v40 = vadd.f32 %v2395_v1, %v1005_v34  ;;  %v736_v34 = vmax.f32 %v668_v28, 0.0 }
 0x24a   : > { %v1340_v41 = vpop.f32.mrf.mxu2 }
 0x24b   : > { %v1109_v43 = vmax.f32 %v1006_v40, 0.0  ;;  %v1341_v46 = vadd.f32 %v2491_v39, %v1340_v41  ;;  %v769_v41 = vpack.c.bf16 %v737_v37, %v736_v34 }
 0x24d   : > { %v1153_v44 = vpack.c.bf16 %v1109_v43, %v1108_v42  ;;  %1472 = vst.msk [vmem:[%s2495_s24 + $0x98] sm:$0xff] %vm1452_vm4, %v1341_v46 }
 0x24f   : > { %1971 = vmatmul.msk.bf16.gmra.mxu2 %vm1187_vm3, %v1153_v44 }
 0x250   : > { %v1008_v49 = vpop.f32.mrf.mxu1 }
 0x251   : > { %v1009_v45 = vadd.f32 %v2395_v1, %v1008_v49 }
 0x252   : > { %v1343_v52 = vpop.f32.mrf.mxu2 }
 0x253   : > { %v1344_v53 = vadd.f32 %v2491_v39, %v1343_v52  ;;  %1940 = vmatmul.msk.bf16.gmra.mxu3 %vm807_vm2, %v766_v51  ;;  %v1110_v60 = vmax.f32 %v1009_v45, 0.0 }
 0x255   : > { %1473 = vst.msk [vmem:[%s2495_s24 + $0xa0] sm:$0xff] %vm1452_vm4, %v1344_v53  ;;  %v738_v53 = vmax.f32 %v673_v47, 0.0 }
 0x258   : > { %v1010_v54 = vpop.f32.mrf.mxu1 }
 0x259   : > { %v1011_v57 = vadd.f32 %v2395_v1, %v1010_v54  ;;  %v770_v54 = vpack.c.bf16 %v738_v53, %v738_v53 }
 0x25a   : > { %v1345_v58 = vpop.f32.mrf.mxu2 }
 0x25b   : > { %v1111_v61 = vmax.f32 %v1011_v57, 0.0  ;;  %v1346_v62 = vadd.f32 %v2491_v39, %v1345_v58 }
 0x25d   : > { %v1154_v2 = vpack.c.bf16 %v1111_v61, %v1110_v60  ;;  %1474 = vst.msk [vmem:[%s2495_s24 + $0xa8] sm:$0xff] %vm1452_vm4, %v1346_v62 }
 0x25f   : > { %1972 = vmatmul.msk.bf16.gmra.mxu2 %vm1187_vm3, %v1154_v2 }
 0x260   : > { %v1013_v3 = vpop.f32.mrf.mxu1 }
 0x261   : > { %v1014_v8 = vadd.f32 %v2395_v1, %v1013_v3 }
 0x262   : > { %v1348_v5 = vpop.f32.mrf.mxu2 }
 0x263   : > { %v1349_v6 = vadd.f32 %v2491_v39, %v1348_v5  ;;  %1941 = vmatmul.msk.bf16.gmra.mxu3 %vm807_vm2, %v767_v4  ;;  %v1112_v14 = vmax.f32 %v1014_v8, 0.0 }
 0x265   : > { %1475 = vst.msk [vmem:[%s2495_s24 + $0xb0] sm:$0xff] %vm1452_vm4, %v1349_v6 }
 0x268   : > { %v1015_v9 = vpop.f32.mrf.mxu1 }
 0x269   : > { %v1016_v13 = vadd.f32 %v2395_v1, %v1015_v9 }
 0x26a   : > { %v1350_v10 = vpop.f32.mrf.mxu2 }
 0x26b   : > { %v1113_v15 = vmax.f32 %v1016_v13, 0.0  ;;  %v1351_v16 = vadd.f32 %v2491_v39, %v1350_v10 }
 0x26d   : > { %v1155_v20 = vpack.c.bf16 %v1113_v15, %v1112_v14  ;;  %1476 = vst.msk [vmem:[%s2495_s24 + $0xb8] sm:$0xff] %vm1452_vm4, %v1351_v16 }
 0x26f   : > { %1973 = vmatmul.msk.bf16.gmra.mxu2 %vm1187_vm3, %v1155_v20 }
 0x270   : > { %v1018_v21 = vpop.f32.mrf.mxu1 }
 0x271   : > { %v1019_v26 = vadd.f32 %v2395_v1, %v1018_v21 }
 0x272   : > { %v1353_v23 = vpop.f32.mrf.mxu2 }
 0x273   : > { %v1354_v24 = vadd.f32 %v2491_v39, %v1353_v23  ;;  %1942 = vmatmul.msk.bf16.gmra.mxu3 %vm807_vm2, %v768_v22  ;;  %v1114_v36 = vmax.f32 %v1019_v26, 0.0 }
 0x275   : > { %1477 = vst.msk [vmem:[%s2495_s24 + $0xc0] sm:$0xff] %vm1452_vm4, %v1354_v24 }
 0x278   : > { %v1020_v27 = vpop.f32.mrf.mxu1 }
 0x279   : > { %v1021_v30 = vadd.f32 %v2395_v1, %v1020_v27 }
 0x27a   : > { %v1355_v31 = vpop.f32.mrf.mxu2 }
 0x27b   : > { %v1115_v32 = vmax.f32 %v1021_v30, 0.0  ;;  %v1356_v33 = vadd.f32 %v2491_v39, %v1355_v31 }
 0x27d   : > { %v1156_v38 = vpack.c.bf16 %v1115_v32, %v1114_v36  ;;  %1478 = vst.msk [vmem:[%s2495_s24 + $0xc8] sm:$0xff] %vm1452_vm4, %v1356_v33 }
 0x27f   : > { %1974 = vmatmul.msk.bf16.gmra.mxu2 %vm1187_vm3, %v1156_v38 }
 0x280   : > { %v1023_v40 = vpop.f32.mrf.mxu1 }
 0x281   : > { %v1024_v46 = vadd.f32 %v2395_v1, %v1023_v40 }
 0x282   : > { %v1358_v42 = vpop.f32.mrf.mxu2 }
 0x283   : > { %v1359_v43 = vadd.f32 %v2491_v39, %v1358_v42  ;;  %1943 = vmatmul.msk.bf16.gmra.mxu3 %vm807_vm2, %v769_v41  ;;  %v1116_v50 = vmax.f32 %v1024_v46, 0.0 }
 0x285   : > { %1479 = vst.msk [vmem:[%s2495_s24 + $0xd0] sm:$0xff] %vm1452_vm4, %v1359_v43 }
 0x288   : > { %v1025_v48 = vpop.f32.mrf.mxu1 }
 0x289   : > { %v1026_v44 = vadd.f32 %v2395_v1, %v1025_v48  ;;  %v2685_v1 = vld [vmem:[%s2961_s4] ss:$0 sm:$0xff] }
 0x28a   : > { %v1360_v49 = vpop.f32.mrf.mxu2 }
 0x28b   : > { %v1117_v51 = vmax.f32 %v1026_v44, 0.0  ;;  %v1361_v52 = vadd.f32 %v2491_v39, %v1360_v49 }
 0x28d   : > { %v1157_v45 = vpack.c.bf16 %v1117_v51, %v1116_v50  ;;  %1480 = vst.msk [vmem:[%s2495_s24 + $0xd8] sm:$0xff] %vm1452_vm4, %v1361_v52 }
 0x28f   : > { %1975 = vmatmul.msk.bf16.gmra.mxu2 %vm1187_vm3, %v1157_v45 }
 0x290   : > { %v1028_v55 = vpop.f32.mrf.mxu1 }
 0x291   : > { %v1029_v57 = vadd.f32 %v2685_v1, %v1028_v55 }
 0x292   : > { %v1363_v56 = vpop.f32.mrf.mxu2 }
 0x293   : > { %v1364_v35 = vadd.f32 %v2491_v39, %v1363_v56  ;;  %1944 = vmatmul.msk.bf16.gmra.mxu3 %vm807_vm2, %v770_v54  ;;  %v1118_v61 = vmax.f32 %v1029_v57, 0.0 }
 0x295   : > { %1481 = vst.msk [vmem:[%s2495_s24 + $0xe0] sm:$0xff] %vm1452_vm4, %v1364_v35 }
 0x298   : > { %v1030_v58 = vpop.f32.mrf.mxu1 }
 0x299   : > { %v1031_v59 = vadd.f32 %v2685_v1, %v1030_v58 }
 0x29a   : > { %v1365_v60 = vpop.f32.mrf.mxu2 }
 0x29b   : > { %v1119_v62 = vmax.f32 %v1031_v59, 0.0  ;;  %v1366_v63 = vadd.f32 %v2491_v39, %v1365_v60 }
 0x29d   : > { %v1158_v0 = vpack.c.bf16 %v1119_v62, %v1118_v61  ;;  %1482 = vst.msk [vmem:[%s2495_s24 + $0xe8] sm:$0xff] %vm1452_vm4, %v1366_v63 }
 0x29f   : > { %1976 = vmatmul.msk.bf16.gmra.mxu2 %vm1187_vm3, %v1158_v0 }
 0x2a2   : > { %v1368_v2 = vpop.f32.mrf.mxu2 }
 0x2a3   : > { %v1369_v3 = vadd.f32 %v2491_v39, %v1368_v2 }
 0x2a5   : > { %1483 = vst.msk [vmem:[%s2495_s24 + $0xf0] sm:$0xff] %vm1452_vm4, %v1369_v3 }
 0x2a6   : > { %v1033_v4 = vpop.f32.mrf.mxu3 }
 0x2a7   : > { %v1034_v7 = vadd.f32 %v2685_v1, %v1033_v4 }
 0x2a9   : > { %v1120_v11 = vmax.f32 %v1034_v7, 0.0 }
 0x2aa   : > { %v1370_v5 = vpop.f32.mrf.mxu2 }
 0x2ab   : > { %v1371_v6 = vadd.f32 %v2491_v39, %v1370_v5 }
 0x2ad   : > { %1484 = vst.msk [vmem:[%s2495_s24 + $0xf8] sm:$0xff] %vm1452_vm4, %v1371_v6 }
 0x2ae   : > { %v1035_v8 = vpop.f32.mrf.mxu3 }
 0x2af   : > { %v1036_v9 = vadd.f32 %v2685_v1, %v1035_v8 }
 0x2b1   : > { %v1121_v12 = vmax.f32 %v1036_v9, 0.0 }
 0x2b2   : > { %v1373_v13 = vpop.f32.mrf.mxu2 }
 0x2b3   : > { %v1159_v10 = vpack.c.bf16 %v1121_v12, %v1120_v11  ;;  %v1374_v14 = vadd.f32 %v2491_v39, %v1373_v13 }
 0x2b5   : > { %1485 = vst.msk [vmem:[%s2495_s24 + $0x100] sm:$0xff] %vm1452_vm4, %v1374_v14  ;;  %1977 = vmatmul.msk.bf16.vlgmr.msra.gmra.mxu3 %vm1187_vm3, %v1159_v10 }
 0x2b6   : > { %v1038_v15 = vpop.f32.mrf.mxu3 }
 0x2b7   : > { %v1039_v18 = vadd.f32 %v2685_v1, %v1038_v15 }
 0x2b9   : > { %v1122_v21 = vmax.f32 %v1039_v18, 0.0 }
 0x2ba   : > { %v1375_v16 = vpop.f32.mrf.mxu2 }
 0x2bb   : > { %v1376_v17 = vadd.f32 %v2491_v39, %v1375_v16 }
 0x2bd   : > { %1486 = vst.msk [vmem:[%s2495_s24 + $0x108] sm:$0xff] %vm1452_vm4, %v1376_v17 }
 0x2be   : > { %v1040_v19 = vpop.f32.mrf.mxu3 }
 0x2bf   : > { %v1041_v20 = vadd.f32 %v2685_v1, %v1040_v19 }
 0x2c1   : > { %v1123_v22 = vmax.f32 %v1041_v20, 0.0 }
 0x2c2   : > { %v1378_v23 = vpop.f32.mrf.mxu2 }
 0x2c3   : > { %v1160_v24 = vpack.c.bf16 %v1123_v22, %v1122_v21  ;;  %v1379_v25 = vadd.f32 %v2491_v39, %v1378_v23 }
 0x2c5   : > { %1487 = vst.msk [vmem:[%s2495_s24 + $0x110] sm:$0xff] %vm1452_vm4, %v1379_v25  ;;  %1978 = vmatmul.msk.bf16.gmra.mxu3 %vm1187_vm3, %v1160_v24 }
 0x2c6   : > { %v1043_v26 = vpop.f32.mrf.mxu3 }
 0x2c7   : > { %v1044_v29 = vadd.f32 %v2685_v1, %v1043_v26 }
 0x2c9   : > { %v1124_v36 = vmax.f32 %v1044_v29, 0.0 }
 0x2ca   : > { %v1380_v27 = vpop.f32.mrf.mxu2 }
 0x2cb   : > { %v1381_v28 = vadd.f32 %v2491_v39, %v1380_v27 }
 0x2cd   : > { %1488 = vst.msk [vmem:[%s2495_s24 + $0x118] sm:$0xff] %vm1452_vm4, %v1381_v28 }
 0x2ce   : > { %v1045_v30 = vpop.f32.mrf.mxu3 }
 0x2cf   : > { %v1046_v31 = vadd.f32 %v2685_v1, %v1045_v30 }
 0x2d1   : > { %v1125_v32 = vmax.f32 %v1046_v31, 0.0 }
 0x2d2   : > { %v1383_v33 = vpop.f32.mrf.mxu2 }
 0x2d3   : > { %v1161_v34 = vpack.c.bf16 %v1125_v32, %v1124_v36  ;;  %v1384_v37 = vadd.f32 %v2491_v39, %v1383_v33 }
 0x2d5   : > { %1489 = vst.msk [vmem:[%s2495_s24 + $0x120] sm:$0xff] %vm1452_vm4, %v1384_v37  ;;  %1979 = vmatmul.msk.bf16.gmra.mxu3 %vm1187_vm3, %v1161_v34 }
 0x2d6   : > { %v1048_v38 = vpop.f32.mrf.mxu3 }
 0x2d7   : > { %v1049_v42 = vadd.f32 %v2685_v1, %v1048_v38 }
 0x2d9   : > { %v1126_v47 = vmax.f32 %v1049_v42, 0.0 }
 0x2da   : > { %v1385_v40 = vpop.f32.mrf.mxu2 }
 0x2db   : > { %v1386_v41 = vadd.f32 %v2491_v39, %v1385_v40 }
 0x2dd   : > { %1490 = vst.msk [vmem:[%s2495_s24 + $0x128] sm:$0xff] %vm1452_vm4, %v1386_v41 }
 0x2de   : > { %v1050_v43 = vpop.f32.mrf.mxu3 }
 0x2df   : > { %v1051_v46 = vadd.f32 %v2685_v1, %v1050_v43 }
 0x2e1   : > { %v1127_v48 = vmax.f32 %v1051_v46, 0.0 }
 0x2e2   : > { %v1388_v44 = vpop.f32.mrf.mxu2 }
 0x2e3   : > { %v1162_v49 = vpack.c.bf16 %v1127_v48, %v1126_v47  ;;  %v1389_v50 = vadd.f32 %v2491_v39, %v1388_v44 }
 0x2e5   : > { %1491 = vst.msk [vmem:[%s2495_s24 + $0x130] sm:$0xff] %vm1452_vm4, %v1389_v50  ;;  %1980 = vmatmul.msk.bf16.gmra.mxu3 %vm1187_vm3, %v1162_v49 }
 0x2e6   : > { %v1053_v51 = vpop.f32.mrf.mxu3 }
 0x2e7   : > { %v1054_v45 = vadd.f32 %v2685_v1, %v1053_v51 }
 0x2e9   : > { %v1128_v56 = vmax.f32 %v1054_v45, 0.0 }
 0x2ea   : > { %v1390_v52 = vpop.f32.mrf.mxu2 }
 0x2eb   : > { %v1391_v53 = vadd.f32 %v2491_v39, %v1390_v52 }
 0x2ed   : > { %1492 = vst.msk [vmem:[%s2495_s24 + $0x138] sm:$0xff] %vm1452_vm4, %v1391_v53 }
 0x2ee   : > { %v1055_v54 = vpop.f32.mrf.mxu3 }
 0x2ef   : > { %v1056_v55 = vadd.f32 %v2685_v1, %v1055_v54 }
 0x2f1   : > { %v1129_v35 = vmax.f32 %v1056_v55, 0.0 }
 0x2f2   : > { %v1393_v57 = vpop.f32.mrf.mxu2 }
 0x2f3   : > { %v1163_v58 = vpack.c.bf16 %v1129_v35, %v1128_v56  ;;  %v1394_v59 = vadd.f32 %v2491_v39, %v1393_v57 }
 0x2f5   : > { %1493 = vst.msk [vmem:[%s2495_s24 + $0x140] sm:$0xff] %vm1452_vm4, %v1394_v59  ;;  %1981 = vmatmul.msk.bf16.gmra.mxu3 %vm1187_vm3, %v1163_v58 }
 0x2f6   : > { %v1058_v60 = vpop.f32.mrf.mxu3 }
 0x2f7   : > { %v1059_v63 = vadd.f32 %v2685_v1, %v1058_v60 }
 0x2f9   : > { %v1130_v3 = vmax.f32 %v1059_v63, 0.0 }
 0x2fa   : > { %v1395_v61 = vpop.f32.mrf.mxu2 }
 0x2fb   : > { %v1396_v62 = vadd.f32 %v2491_v39, %v1395_v61 }
 0x2fd   : > { %1494 = vst.msk [vmem:[%s2495_s24 + $0x148] sm:$0xff] %vm1452_vm4, %v1396_v62 }
 0x2fe   : > { %v1060_v0 = vpop.f32.mrf.mxu3 }
 0x2ff   : > { %v1061_v2 = vadd.f32 %v2685_v1, %v1060_v0 }
 0x301   : > { %v1131_v4 = vmax.f32 %v1061_v2, 0.0 }
 0x302   : > { %v1398_v5 = vpop.f32.mrf.mxu2 }
 0x303   : > { %v1164_v6 = vpack.c.bf16 %v1131_v4, %v1130_v3  ;;  %v1399_v7 = vadd.f32 %v2491_v39, %v1398_v5 }
 0x305   : > { %1495 = vst.msk [vmem:[%s2495_s24 + $0x150] sm:$0xff] %vm1452_vm4, %v1399_v7  ;;  %1982 = vmatmul.msk.bf16.gmra.mxu3 %vm1187_vm3, %v1164_v6 }
 0x306   : > { %v1063_v8 = vpop.f32.mrf.mxu3 }
 0x307   : > { %v1064_v12 = vadd.f32 %v2685_v1, %v1063_v8 }
 0x309   : > { %v1132_v14 = vmax.f32 %v1064_v12, 0.0 }
 0x30a   : > { %v1400_v9 = vpop.f32.mrf.mxu2 }
 0x30b   : > { %v1401_v11 = vadd.f32 %v2491_v39, %v1400_v9 }
 0x30d   : > { %1496 = vst.msk [vmem:[%s2495_s24 + $0x158] sm:$0xff] %vm1452_vm4, %v1401_v11 }
 0x30e   : > { %v1065_v13 = vpop.f32.mrf.mxu3 }
 0x30f   : > { %v1066_v10 = vadd.f32 %v2685_v1, %v1065_v13 }
 0x311   : > { %v1133_v15 = vmax.f32 %v1066_v10, 0.0 }
 0x312   : > { %v1403_v16 = vpop.f32.mrf.mxu2 }
 0x313   : > { %v1165_v17 = vpack.c.bf16 %v1133_v15, %v1132_v14  ;;  %v1404_v18 = vadd.f32 %v2491_v39, %v1403_v16 }
 0x315   : > { %1497 = vst.msk [vmem:[%s2495_s24 + $0x160] sm:$0xff] %vm1452_vm4, %v1404_v18  ;;  %1983 = vmatmul.msk.bf16.gmra.mxu3 %vm1187_vm3, %v1165_v17 }
 0x316   : > { %v1068_v19 = vpop.f32.mrf.mxu3 }
 0x317   : > { %v1069_v20 = vadd.f32 %v2685_v1, %v1068_v19 }
 0x319   : > { %v1134_v23 = vmax.f32 %v1069_v20, 0.0 }
 0x31a   : > { %v1405_v21 = vpop.f32.mrf.mxu2 }
 0x31b   : > { %v1406_v22 = vadd.f32 %v2491_v39, %v1405_v21  ;;  %v1166_v25 = vpack.c.bf16 %v1134_v23, %v1134_v23 }
 0x31d   : > { %1498 = vst.msk [vmem:[%s2495_s24 + $0x168] sm:$0xff] %vm1452_vm4, %v1406_v22 }
 0x31e   : > { %v1070_v24 = vpop.f32.mrf.mxu3 }
 0x322   : > { %v1408_v26 = vpop.f32.mrf.mxu2 }
 0x323   : > { %v1409_v27 = vadd.f32 %v2491_v39, %v1408_v26 }
 0x325   : > { %1499 = vst.msk [vmem:[%s2495_s24 + $0x170] sm:$0xff] %vm1452_vm4, %v1409_v27  ;;  %1984 = vmatmul.msk.bf16.gmra.mxu3 %vm1187_vm3, %v1166_v25 }
 0x32a   : > { %v1410_v1 = vpop.f32.mrf.mxu2 }
 0x32b   : > { %v1411_v28 = vadd.f32 %v2491_v39, %v1410_v1 }
 0x32d   : > { %1500 = vst.msk [vmem:[%s2495_s24 + $0x178] sm:$0xff] %vm1452_vm4, %v1411_v28 }
 0x338   : > { %v1413_v29 = vpop.f32.mrf.mxu3 }
 0x339   : > { %v1414_v30 = vadd.f32 %v2491_v39, %v1413_v29 }
 0x33b   : > { %1501 = vst.msk [vmem:[%s2495_s24 + $0x180] sm:$0xff] %vm1452_vm4, %v1414_v30 }
 0x340   : > { %v1415_v31 = vpop.f32.mrf.mxu3 }
 0x341   : > { %v1416_v36 = vadd.f32 %v2491_v39, %v1415_v31 }
 0x343   : > { %1502 = vst.msk [vmem:[%s2495_s24 + $0x188] sm:$0xff] %vm1452_vm4, %v1416_v36 }
 0x348   : > { %v1418_v32 = vpop.f32.mrf.mxu3 }
 0x349   : > { %v1419_v33 = vadd.f32 %v2491_v39, %v1418_v32 }
 0x34b   : > { %1503 = vst.msk [vmem:[%s2495_s24 + $0x190] sm:$0xff] %vm1452_vm4, %v1419_v33 }
 0x350   : > { %v1420_v34 = vpop.f32.mrf.mxu3 }
 0x351   : > { %v1421_v37 = vadd.f32 %v2491_v39, %v1420_v34 }
 0x353   : > { %1504 = vst.msk [vmem:[%s2495_s24 + $0x198] sm:$0xff] %vm1452_vm4, %v1421_v37 }
 0x358   : > { %v1423_v38 = vpop.f32.mrf.mxu3 }
 0x359   : > { %v1424_v40 = vadd.f32 %v2491_v39, %v1423_v38 }
 0x35b   : > { %1505 = vst.msk [vmem:[%s2495_s24 + $0x1a0] sm:$0xff] %vm1452_vm4, %v1424_v40 }
 0x360   : > { %v1425_v41 = vpop.f32.mrf.mxu3 }
 0x361   : > { %v1426_v42 = vadd.f32 %v2491_v39, %v1425_v41 }
 0x363   : > { %1506 = vst.msk [vmem:[%s2495_s24 + $0x1a8] sm:$0xff] %vm1452_vm4, %v1426_v42 }
 0x368   : > { %v1428_v43 = vpop.f32.mrf.mxu3 }
 0x369   : > { %v1429_v46 = vadd.f32 %v2491_v39, %v1428_v43 }
 0x36b   : > { %1507 = vst.msk [vmem:[%s2495_s24 + $0x1b0] sm:$0xff] %vm1452_vm4, %v1429_v46 }
 0x370   : > { %v1430_v47 = vpop.f32.mrf.mxu3 }
 0x371   : > { %v1431_v48 = vadd.f32 %v2491_v39, %v1430_v47 }
 0x373   : > { %1508 = vst.msk [vmem:[%s2495_s24 + $0x1b8] sm:$0xff] %vm1452_vm4, %v1431_v48 }
 0x378   : > { %v1433_v44 = vpop.f32.mrf.mxu3 }
 0x379   : > { %v1434_v49 = vadd.f32 %v2491_v39, %v1433_v44 }
 0x37b   : > { %1509 = vst.msk [vmem:[%s2495_s24 + $0x1c0] sm:$0xff] %vm1452_vm4, %v1434_v49 }
 0x380   : > { %v1435_v50 = vpop.f32.mrf.mxu3 }
 0x381   : > { %v1436_v51 = vadd.f32 %v2491_v39, %v1435_v50 }
 0x383   : > { %1510 = vst.msk [vmem:[%s2495_s24 + $0x1c8] sm:$0xff] %vm1452_vm4, %v1436_v51 }
 0x388   : > { %v1438_v52 = vpop.f32.mrf.mxu3 }
 0x389   : > { %v1439_v53 = vadd.f32 %v2491_v39, %v1438_v52 }
 0x38b   : > { %1511 = vst.msk [vmem:[%s2495_s24 + $0x1d0] sm:$0xff] %vm1452_vm4, %v1439_v53 }
 0x390   : > { %v1440_v45 = vpop.f32.mrf.mxu3 }
 0x391   : > { %v1441_v54 = vadd.f32 %v2491_v39, %v1440_v45 }
 0x393   : > { %1512 = vst.msk [vmem:[%s2495_s24 + $0x1d8] sm:$0xff] %vm1452_vm4, %v1441_v54 }
 0x398   : > { %v1443_v55 = vpop.f32.mrf.mxu3 }
 0x399   : > { %v1444_v56 = vadd.f32 %v2491_v39, %v1443_v55 }
 0x39b   : > { %1513 = vst.msk [vmem:[%s2495_s24 + $0x1e0] sm:$0xff] %vm1452_vm4, %v1444_v56 }
 0x3a0   : > { %v1445_v35 = vpop.f32.mrf.mxu3 }
 0x3a1   : > { %v1446_v57 = vadd.f32 %v2491_v39, %v1445_v35 }
 0x3a3   : > { %1514 = vst.msk [vmem:[%s2495_s24 + $0x1e8] sm:$0xff] %vm1452_vm4, %v1446_v57 }
 0x3a8   : > { %v1448_v58 = vpop.f32.mrf.mxu3 }
 0x3a9   : > { %v1449_v59 = vadd.f32 %v2491_v39, %v1448_v58 }
 0x3ab   : > { %1515 = vst.msk [vmem:[%s2495_s24 + $0x1f0] sm:$0xff] %vm1452_vm4, %v1449_v59 }
 0x3ac   : > { %1522 = sbr.rel (!%p2264_p4) target bundleno = 1009 (0x3f1), region = 52 }
 0x3b0   : > { %v1450_v60 = vpop.f32.mrf.mxu3 }
 0x3b1   : > { %s2975_s11 = smov (!%p1525_p8, %s1524_s11), 63 }
 0x3b2   : > { %s1985_s17 = sshll.u32 %s2975_s11, 3 }
 0x3b3   : > { %p1988_p9 = scmp.eq.s32.totalorder %s1985_s17, 0 }
 0x3b4   : > { %s2828_s18 = sshrl.u32 (!%p1988_p9), %s2975_s11, 5 }
 0x3b5   : > { %1533 = sbr.rel (%p1988_p9) target bundleno = 1009 (0x3f1), region = 56  ;;  %p1989_p10 = scmp.le.s32.totalorder (!%p1988_p9), %s2828_s18, 0 }
 0x3ba   : > { %1812 = sbr.rel (%p1989_p10) target bundleno = 992 (0x3e0), region = 132  ;;  %s2966_s27 = smov (!%p1989_p10), %s2822_s16 }
 0x3bb   : > { %s2967_s9 = smov (!%p1989_p10), %s2495_s24  ;;  %s2837_s14 = smov (!%p1989_p10), 0  }
 0x3bc   : > { %s2839_s20 = smov (!%p1989_p10), 0  }
 0x3bf LB: >> { %v1658_v39 = vld [vmem:[%s2173_s9] sm:$0xff]  ;;  %v1660_v61 = vld [vmem:[%s2173_s9 + $0x8] sm:$0xff]  ;;  %v1662_v62 = vld [vmem:[%s2173_s9 + $0x10] sm:$0xff]  ;;  %s1722_s21 = sadd.s32 1, %s2177_s14  ;;  %s1652_s20 = sadd.s32 1, %s2181_s20   ;;  %s2181_s20 = sphi %s2839_s20, %s1652_s20   ;;  %s2177_s14 = sphi %s2837_s14, %s2970_s14   ;;  %s2173_s9 = sphi %s2967_s9, %s2969_s9   ;;  %s2169_s27 = sphi %s2966_s27, %s2968_s27  }
 0x3c0   : >> { %1659 = vst [vmem:[%s2169_s27] sm:$0xff] %v1658_v39  ;;  %v1664_v63 = vld [vmem:[%s2173_s9 + $0x18] sm:$0xff]  ;;  %p1723_p11 = scmp.ge.s32.totalorder %s1722_s21, %s2828_s18  ;;  %v1666_v0 = vld [vmem:[%s2173_s9 + $0x20] sm:$0xff]  ;;  %v1668_v2 = vld [vmem:[%s2173_s9 + $0x28] sm:$0xff]  ;;  %p1651_p12 = scmp.ge.s32.totalorder %s1652_s20, %s2828_s18 }
 0x3c1   : >> { %1661 = vst [vmem:[%s2169_s27 + $0x8] sm:$0xff] %v1660_v61  ;;  %v1670_v3 = vld [vmem:[%s2173_s9 + $0x30] sm:$0xff]  ;;  %v1672_v4 = vld [vmem:[%s2173_s9 + $0x38] sm:$0xff]  ;;  %v1674_v5 = vld [vmem:[%s2173_s9 + $0x40] sm:$0xff] }
 0x3c2   : >> { %1663 = vst [vmem:[%s2169_s27 + $0x10] sm:$0xff] %v1662_v62  ;;  %s2977_s21 = smov (%p1723_p11, %s1722_s21), 0  ;;  %v1676_v6 = vld [vmem:[%s2173_s9 + $0x48] sm:$0xff]  ;;  %v1678_v7 = vld [vmem:[%s2173_s9 + $0x50] sm:$0xff]  ;;  %v1680_v8 = vld [vmem:[%s2173_s9 + $0x58] sm:$0xff] }
 0x3c3   : >> { %1665 = vst [vmem:[%s2169_s27 + $0x18] sm:$0xff] %v1664_v63  ;;  %s1990_s22 = sshll.u32 %s2977_s21, 8  ;;  %v1682_v9 = vld [vmem:[%s2173_s9 + $0x60] sm:$0xff]  ;;  %v1684_v11 = vld [vmem:[%s2173_s9 + $0x68] sm:$0xff]  ;;  %v1686_v12 = vld [vmem:[%s2173_s9 + $0x70] sm:$0xff]  ;;  %s2970_s14 = smov %s2977_s21 }
 0x3c4   : >> { %1667 = vst [vmem:[%s2169_s27 + $0x20] sm:$0xff] %v1666_v0  ;;  %s2871_s23 = scalar_lea.vmem %s2495_s24, %s1990_s22 [#allocation2]   ;;  %s2874_s26 = scalar_lea.vmem %s2822_s16, %s1990_s22   ;;  %v1688_v13 = vld [vmem:[%s2173_s9 + $0x78] sm:$0xff]  ;;  %v1690_v10 = vld [vmem:[%s2173_s9 + $0x80] sm:$0xff]  ;;  %v1692_v14 = vld [vmem:[%s2173_s9 + $0x88] sm:$0xff] }
 0x3c5   : >> { %1669 = vst [vmem:[%s2169_s27 + $0x28] sm:$0xff] %v1668_v2  ;;  %v1694_v15 = vld [vmem:[%s2173_s9 + $0x90] sm:$0xff]  ;;  %v1696_v16 = vld [vmem:[%s2173_s9 + $0x98] sm:$0xff]  ;;  %v1698_v17 = vld [vmem:[%s2173_s9 + $0xa0] sm:$0xff] }
 0x3c6   : >> { %1671 = vst [vmem:[%s2169_s27 + $0x30] sm:$0xff] %v1670_v3  ;;  %v1700_v18 = vld [vmem:[%s2173_s9 + $0xa8] sm:$0xff]  ;;  %v1702_v19 = vld [vmem:[%s2173_s9 + $0xb0] sm:$0xff]  ;;  %v1704_v20 = vld [vmem:[%s2173_s9 + $0xb8] sm:$0xff] }
 0x3c7   : >> { %1673 = vst [vmem:[%s2169_s27 + $0x38] sm:$0xff] %v1672_v4  ;;  %v1706_v21 = vld [vmem:[%s2173_s9 + $0xc0] sm:$0xff]  ;;  %v1708_v22 = vld [vmem:[%s2173_s9 + $0xc8] sm:$0xff]  ;;  %v1710_v23 = vld [vmem:[%s2173_s9 + $0xd0] sm:$0xff] }
 0x3c8   : >> { %1675 = vst [vmem:[%s2169_s27 + $0x40] sm:$0xff] %v1674_v5  ;;  %v1712_v24 = vld [vmem:[%s2173_s9 + $0xd8] sm:$0xff]  ;;  %v1714_v25 = vld [vmem:[%s2173_s9 + $0xe0] sm:$0xff]  ;;  %v1716_v26 = vld [vmem:[%s2173_s9 + $0xe8] sm:$0xff] }
 0x3c9   : >> { %1677 = vst [vmem:[%s2169_s27 + $0x48] sm:$0xff] %v1676_v6  ;;  %v1718_v27 = vld [vmem:[%s2173_s9 + $0xf0] sm:$0xff]  ;;  %v1720_v1 = vld [vmem:[%s2173_s9 + $0xf8] sm:$0xff]  ;;  %s2969_s9 = smov %s2871_s23 }
 0x3ca   : >> { %1679 = vst [vmem:[%s2169_s27 + $0x50] sm:$0xff] %v1678_v7 }
 0x3cb   : >> { %1681 = vst [vmem:[%s2169_s27 + $0x58] sm:$0xff] %v1680_v8 }
 0x3cc   : >> { %1683 = vst [vmem:[%s2169_s27 + $0x60] sm:$0xff] %v1682_v9 }
 0x3cd   : >> { %1685 = vst [vmem:[%s2169_s27 + $0x68] sm:$0xff] %v1684_v11 }
 0x3ce   : >> { %1687 = vst [vmem:[%s2169_s27 + $0x70] sm:$0xff] %v1686_v12 }
 0x3cf   : >> { %1689 = vst [vmem:[%s2169_s27 + $0x78] sm:$0xff] %v1688_v13 }
 0x3d0   : >> { %1691 = vst [vmem:[%s2169_s27 + $0x80] sm:$0xff] %v1690_v10 }
 0x3d1   : >> { %1693 = vst [vmem:[%s2169_s27 + $0x88] sm:$0xff] %v1692_v14 }
 0x3d2   : >> { %1695 = vst [vmem:[%s2169_s27 + $0x90] sm:$0xff] %v1694_v15 }
 0x3d3   : >> { %1697 = vst [vmem:[%s2169_s27 + $0x98] sm:$0xff] %v1696_v16 }
 0x3d4   : >> { %1699 = vst [vmem:[%s2169_s27 + $0xa0] sm:$0xff] %v1698_v17 }
 0x3d5   : >> { %1701 = vst [vmem:[%s2169_s27 + $0xa8] sm:$0xff] %v1700_v18 }
 0x3d6   : >> { %1703 = vst [vmem:[%s2169_s27 + $0xb0] sm:$0xff] %v1702_v19 }
 0x3d7   : >> { %1705 = vst [vmem:[%s2169_s27 + $0xb8] sm:$0xff] %v1704_v20 }
 0x3d8   : >> { %1707 = vst [vmem:[%s2169_s27 + $0xc0] sm:$0xff] %v1706_v21 }
 0x3d9   : >> { %1709 = vst [vmem:[%s2169_s27 + $0xc8] sm:$0xff] %v1708_v22 }
 0x3da   : >> { %1711 = vst [vmem:[%s2169_s27 + $0xd0] sm:$0xff] %v1710_v23 }
 0x3db   : >> { %1713 = vst [vmem:[%s2169_s27 + $0xd8] sm:$0xff] %v1712_v24  ;;  %1654 = sbr.rel (!%p1651_p12) target bundleno = 959 (0x3bf), region = 138 }
 0x3dc   : >> { %1715 = vst [vmem:[%s2169_s27 + $0xe0] sm:$0xff] %v1714_v25 }
 0x3dd   : >> { %1717 = vst [vmem:[%s2169_s27 + $0xe8] sm:$0xff] %v1716_v26 }
 0x3de   : >> { %1719 = vst [vmem:[%s2169_s27 + $0xf0] sm:$0xff] %v1718_v27 }
 0x3df   : >> { %1721 = vst [vmem:[%s2169_s27 + $0xf8] sm:$0xff] %v1720_v1  ;;  %s2968_s27 = smov %s2874_s26 }
 0x3e0 PF: > { %s2939_s19 = sand.u32 31, %s2975_s11   ;;  %s2008_s29 = sshll.u32 %s2828_s18, 8 }
 0x3e1   : > { %s1733_s30 = scalar_lea.vmem %s2495_s24, %s2008_s29 [#allocation2]   ;;  %s1735_s10 = scalar_lea.vmem %s2822_s16, %s2008_s29  }
 0x3e2   : > { %p1995_p13 = scmp.le.s32.totalorder %s2939_s19, 0 }
 0x3e3   : > { %s2183_s12 = smov (!%p1995_p13), %s1735_s10   ;;  %s2187_s13 = smov (!%p1995_p13), %s1733_s30  }
 0x3e4   : > { %1826 = sbr.rel (%p1995_p13) target bundleno = 1009 (0x3f1), region = 143  ;;  %s2191_s15 = smov (!%p1995_p13), 0  }
 0x3e5   : > { %s2195_s17 = smov (!%p1995_p13), 0  }
 0x3e9 LB: >> { %v1745_v28 = vld [vmem:[%s2189_s13] sm:$0xff]  ;;  %s1747_s11 = sadd.s32 1, %s2193_s15  ;;  %s1739_s17 = sadd.s32 1, %s2197_s17   ;;  %s2197_s17 = sphi %s2195_s17, %s1739_s17   ;;  %s2193_s15 = sphi %s2191_s15, %s2192_s15   ;;  %s2189_s13 = sphi %s2187_s13, %s1752_s13   ;;  %s2185_s12 = sphi %s2183_s12, %s1753_s12  }
 0x3ea   : >> { %1746 = vst [vmem:[%s2185_s12] sm:$0xff] %v1745_v28  ;;  %p1748_p0 = scmp.ge.s32.totalorder %s1747_s11, %s2939_s19  ;;  %p1738_p1 = scmp.ge.s32.totalorder %s1739_s17, %s2939_s19 }
 0x3ec   : >> { %s2979_s11 = smov (%p1748_p0, %s1747_s11), 0  ;;  %1741 = sbr.rel (!%p1738_p1) target bundleno = 1001 (0x3e9), region = 149 }
 0x3ed   : >> { %s1996_s24 = sshll.u32 %s2979_s11, 3  ;;  %s2192_s15 = smov %s2979_s11  }
 0x3ee   : >> { %s1752_s13 = scalar_lea.vmem %s1733_s30, %s1996_s24 [#allocation2]   ;;  %s1753_s12 = scalar_lea.vmem %s1735_s10, %s1996_s24  }
 0x3f1 PF: > { %p14_p2 = scmp.ge.s32.totalorder %s2254_s28, 4   ;;  %s2971_s24 = smov %s2161_s25 }
 0x3f2   : > { %s2972_s25 = smov %s2262_s8  ;;  %s2973_s26 = smov %s2254_s28 }
 0x3f3   :  { %16 = sbr.rel (!%p14_p2) target bundleno = 2 (0x2), region = 160 }

</bundles_post_ra>
